<compile_context>
chip_gen: v7x
topology: tpu7x:2x2x1
jax: 0.10.0
libtpu: 0.0.40
codegen_flags: <defaults>
</compile_context>

<pallas_src>
import math
import functools

import jax
import jax.numpy as jnp
from jax import lax
from jax.experimental import pallas as pl
from jax.experimental.pallas import tpu as pltpu


# ----------------------------- shared helpers ------------------------------

def _layernorm(x, w, b, eps=1e-5):
    # x: (T, C) f32, w/b: (1, C) f32  — stats kept in f32
    mu = jnp.mean(x, axis=-1, keepdims=True)
    xc = x - mu
    var = jnp.mean(xc * xc, axis=-1, keepdims=True)
    return xc * lax.rsqrt(var + eps) * w + b


def _gelu_tanh(x):
    # matches torch.nn.GELU(approximate='tanh')
    c = math.sqrt(2.0 / math.pi)
    return 0.5 * x * (1.0 + jnp.tanh(c * (x + 0.044715 * x * x * x)))


# --------------------- kernel 1: ln_1 + QKV projection ----------------------

def qkv_kernel(x_ref, ln1_w_ref, ln1_b_ref, w_attn_ref, b_attn_ref,
               q_ref, kT_ref, v_ref, *, n_head):
    x = x_ref[0]                                   # (TT, C) f32
    TT, C = x.shape
    D = C // n_head

    xh = _layernorm(x, ln1_w_ref[...], ln1_b_ref[...]).astype(jnp.bfloat16)
    qkv = jnp.dot(xh, w_attn_ref[...], preferred_element_type=jnp.float32)
    qkv = qkv + b_attn_ref[...]                    # (TT, 3C) f32

    # Q: pre-scale by 1/sqrt(D) ONCE here (instead of scaling the full
    # (H,TQ,TK) score tensor every kv step) and store packed -> lane-dense
    # store (lane dim = C, a multiple of 128).
    q_ref[0] = (qkv[:, :C] * (1.0 / math.sqrt(D))).astype(jnp.bfloat16)

    # K: transpose once on the producer side to (H, D, TT).  The store lane
    # dim is TT (multiple of 128) -> lane-dense, and the attention inner loop
    # never has to transpose K again for the QK^T matmul.
    kT = jnp.transpose(qkv[:, C:2 * C]).astype(jnp.bfloat16)      # (C, TT)
    kT_ref[0] = kT.reshape(n_head, D, TT)

    # V: head-major (H, TT, D).  The D-lane stores are masked, but they happen
    # once per produced element and overlap the QKV matmul, whereas a packed V
    # would force a per-head re-split on every kv step of the attention loop.
    # TODO(synk): emit V lane-dense as (H, D, T) too if the transposed pv
    # matmul form ("hqk,hdk->hqd") lowers without a per-step XLU transpose.
    v = qkv[:, 2 * C:]
    for h in range(n_head):
        v_ref[0, h] = v[:, h * D:(h + 1) * D].astype(jnp.bfloat16)


# ------- kernel 2: flash attention + c_proj + residual + ln_2 + MLP ---------

def attn_mlp_kernel(qi_map_ref, kv_map_ref,
                    x_ref, q_ref, kT_ref, v_ref,
                    w_cproj_ref, b_cproj_ref,
                    ln2_w_ref, ln2_b_ref,
                    w_fc_ref, b_fc_ref, w_mproj_ref, b_mproj_ref,
                    o_ref,
                    q_hm, m_sc, l_sc, acc_sc, y_sc):
    step = pl.program_id(1)
    qi = qi_map_ref[step]          # q-tile index of this step (triangular walk)
    kv = kv_map_ref[step]          # kv-tile index of this step

    n_head, TQ, D = acc_sc.shape

    # First kv step of every q-tile group: reset flash state and head-split the
    # packed, pre-scaled Q tile ONCE into VMEM scratch (not once per kv step).
    @pl.when(kv == 0)
    def _init():
        m_sc[...] = jnp.full(m_sc.shape, -jnp.inf, m_sc.dtype)
        l_sc[...] = jnp.zeros(l_sc.shape, l_sc.dtype)
        acc_sc[...] = jnp.zeros(acc_sc.shape, acc_sc.dtype)
        qp = q_ref[0]                              # (TQ, C) bf16, pre-scaled
        for h in range(n_head):
            q_hm[h] = qp[:, h * D:(h + 1) * D]

    # Scores: Q already scaled, K already transposed -> pure batched matmul,
    # no per-step transpose, no per-step score scaling.
    s = jnp.einsum("hqd,hdk->hqk", q_hm[...], kT_ref[0],
                   preferred_element_type=jnp.float32)      # (H, TQ, TK) f32

    def flash_update(scores):
        m_prev = m_sc[...]                                  # (H, TQ, 1)
        m_new = jnp.maximum(m_prev, jnp.max(scores, axis=-1, keepdims=True))
        alpha = jnp.exp(m_prev - m_new)
        p = jnp.exp(scores - m_new)                         # (H, TQ, TK) f32
        l_sc[...] = alpha * l_sc[...] + jnp.sum(p, axis=-1, keepdims=True)
        # TODO(synk): lane-pack acc/m/l ((TQ, C) / (H, TQ)) to cut the rescale
        # VALU cost when D < 128; needs a cheap per-head alpha lane-broadcast.
        acc_sc[...] = alpha * acc_sc[...] + jnp.einsum(
            "hqk,hkd->hqd", p.astype(jnp.bfloat16), v_ref[0],
            preferred_element_type=jnp.float32)
        m_sc[...] = m_new

    # Off-diagonal kv tiles are fully below the causal diagonal: no mask, no
    # iota/compare/select work at all.
    @pl.when(kv < qi)
    def _off_diag():
        flash_update(s)

    # Diagonal tile: apply the triangular mask, run the last flash update, then
    # the fused epilogue (c_proj + residual + ln_2 + MLP + residual).
    @pl.when(kv == qi)
    def _diag_and_epilogue():
        TK = s.shape[-1]
        row = lax.broadcasted_iota(jnp.int32, (1, TQ, TK), 1)
        col = lax.broadcasted_iota(jnp.int32, (1, TQ, TK), 2)
        flash_update(jnp.where(col <= row, s, -jnp.inf))

        inv_l = pl.reciprocal(l_sc[...], approx=True)       # EUP, not VALU
        # Un-split the heads once (epilogue only) into a lane-packed (TQ, C)
        # buffer so c_proj is a single K=C matmul instead of H skinny K=D dots.
        for h in range(n_head):
            y_sc[:, h * D:(h + 1) * D] = (acc_sc[h] * inv_l[h]).astype(jnp.bfloat16)
        proj = jnp.dot(y_sc[...], w_cproj_ref[...],
                       preferred_element_type=jnp.float32) + b_cproj_ref[...]

        x = x_ref[0]                                        # (TQ, C) f32
        x1 = x + proj

        h2 = _layernorm(x1, ln2_w_ref[...], ln2_b_ref[...]).astype(jnp.bfloat16)
        hid = jnp.dot(h2, w_fc_ref[...], preferred_element_type=jnp.float32)
        hid = _gelu_tanh(hid + b_fc_ref[...]).astype(jnp.bfloat16)
        out = jnp.dot(hid, w_mproj_ref[...], preferred_element_type=jnp.float32)
        out = out + b_mproj_ref[...]

        o_ref[0] = (x1 + out).astype(o_ref.dtype)


# --------------------------------- wrapper ----------------------------------

def gpt2_block(x, params, n_head, *, tile_t=128):
    # tile_t: raise to 256 on v6e/v7x to fill the 256-wide MXU M dimension
    # (re-derive the VMEM budget on v7x, which has 64 MiB/TC); 128 already
    # saturates the v5e 128x128 MXU.
    B, T, C = x.shape
    assert C % n_head == 0
    D = C // n_head
    TT = min(tile_t, T)
    assert T % TT == 0
    ntq = T // TT

    bf16 = jnp.bfloat16
    # bf16 weights for every matmul (f32 accumulation in-kernel); biases/LN stay f32.
    w_attn = params["w_attn"].astype(bf16)                   # (C, 3C)
    w_cproj = params["w_cproj"].astype(bf16)                 # (C, C) single matmul
    w_fc = params["w_fc"].astype(bf16)                       # (C, 4C)
    w_mproj = params["w_mproj"].astype(bf16)                 # (4C, C)

    def rep(shape):
        # grid-invariant operand (fetched once; block index constant over the grid)
        # TODO(synk): pipeline_mode=pl.Buffered(1) would single-buffer these
        # invariant weights on VMEM-tight v7x configs at real GPT-2 widths.
        return pl.BlockSpec(shape, lambda *_, _n=len(shape): (0,) * _n)

    # Generation-aware VMEM cap: at most half of physical VMEM, never >64 MiB
    # (≈32 MiB on v7x's 64 MiB/TC, 64 MiB on v5e/v6e's 128 MiB).
    try:
        phys_vmem = int(pltpu.get_tpu_info().vmem_capacity_bytes)
    except Exception:
        phys_vmem = 128 * 1024 * 1024
    vmem_cap = int(min(64 * 1024 * 1024, phys_vmem // 2))

    # ---- kernel 1: ln_1 + QKV -> q packed/pre-scaled, K transposed, V head-major
    qkv_call = pl.pallas_call(
        functools.partial(qkv_kernel, n_head=n_head),
        out_shape=[
            jax.ShapeDtypeStruct((B, T, C), bf16),           # q  (packed, pre-scaled)
            jax.ShapeDtypeStruct((B, n_head, D, T), bf16),   # kT (transposed)
            jax.ShapeDtypeStruct((B, n_head, T, D), bf16),   # v  (head-major)
        ],
        grid_spec=pltpu.PrefetchScalarGridSpec(
            num_scalar_prefetch=0,
            grid=(B, ntq),
            in_specs=[
                pl.BlockSpec((1, TT, C), lambda b, t: (b, t, 0)),
                rep(params["ln1_w"].shape),
                rep(params["ln1_b"].shape),
                rep(w_attn.shape),
                rep(params["b_attn"].shape),
            ],
            out_specs=[
                pl.BlockSpec((1, TT, C), lambda b, t: (b, t, 0)),
                pl.BlockSpec((1, n_head, D, TT), lambda b, t: (b, 0, 0, t)),
                pl.BlockSpec((1, n_head, TT, D), lambda b, t: (b, 0, t, 0)),
            ],
        ),
        compiler_params=pltpu.CompilerParams(
            dimension_semantics=("parallel", "parallel"),
            vmem_limit_bytes=vmem_cap),
    )
    # TODO(synk): on v5e (lowest HBM BW) compute Q for the current q tile inside
    # kernel 2 instead of round-tripping it through HBM.
    q, kT, v = qkv_call(x, params["ln1_w"], params["ln1_b"], w_attn,
                        params["b_attn"])

    # ---- kernel 2: triangular (qi, kv) schedule via scalar prefetch ----
    # Only nt*(nt+1)/2 kv steps execute; no no-op grid steps above the diagonal.
    # TODO(synk): decouple the KV tile size from TQ (e.g. TK=512) to cut the
    # number of flash rescale passes / per-step overhead at long sequences.
    qi_list, kv_list = [], []
    for i in range(ntq):
        for j in range(i + 1):
            qi_list.append(i)
            kv_list.append(j)
    qi_map = jnp.asarray(qi_list, dtype=jnp.int32)
    kv_map = jnp.asarray(kv_list, dtype=jnp.int32)
    n_steps = len(qi_list)

    out = pl.pallas_call(
        attn_mlp_kernel,
        out_shape=jax.ShapeDtypeStruct((B, T, C), x.dtype),
        grid_spec=pltpu.PrefetchScalarGridSpec(
            num_scalar_prefetch=2,
            grid=(B, n_steps),
            in_specs=[
                pl.BlockSpec((1, TT, C), lambda b, s, qi, kv: (b, qi[s], 0)),             # x
                pl.BlockSpec((1, TT, C), lambda b, s, qi, kv: (b, qi[s], 0)),             # q
                pl.BlockSpec((1, n_head, D, TT), lambda b, s, qi, kv: (b, 0, 0, kv[s])),  # kT
                pl.BlockSpec((1, n_head, TT, D), lambda b, s, qi, kv: (b, 0, kv[s], 0)),  # v
                rep(w_cproj.shape),
                rep(params["b_cproj"].shape),
                rep(params["ln2_w"].shape),
                rep(params["ln2_b"].shape),
                rep(w_fc.shape),
                rep(params["b_fc"].shape),
                rep(w_mproj.shape),
                rep(params["b_mproj"].shape),
            ],
            out_specs=pl.BlockSpec((1, TT, C), lambda b, s, qi, kv: (b, qi[s], 0)),
            scratch_shapes=[
                pltpu.VMEM((n_head, TT, D), bf16),          # head-split pre-scaled Q
                pltpu.VMEM((n_head, TT, 1), jnp.float32),   # running max m
                pltpu.VMEM((n_head, TT, 1), jnp.float32),   # running sum l
                pltpu.VMEM((n_head, TT, D), jnp.float32),   # output accumulator
                pltpu.VMEM((TT, C), bf16),                  # lane-packed y for c_proj
            ],
        ),
        compiler_params=pltpu.CompilerParams(
            dimension_semantics=("parallel", "arbitrary"),
            vmem_limit_bytes=vmem_cap),
    )(qi_map, kv_map, x, q, kT, v,
      w_cproj, params["b_cproj"], params["ln2_w"], params["ln2_b"],
      w_fc, params["b_fc"], w_mproj, params["b_mproj"])
    return out


# ------------------------- pure-JAX reference (check) ------------------------

def gpt2_block_ref(x, p, n_head):
    B, T, C = x.shape
    D = C // n_head

    def ln(z, w, b, eps=1e-5):
        mu = jnp.mean(z, axis=-1, keepdims=True)
        var = jnp.mean((z - mu) ** 2, axis=-1, keepdims=True)
        return (z - mu) / jnp.sqrt(var + eps) * w + b

    xh = ln(x, p["ln1_w"], p["ln1_b"])
    qkv = xh @ p["w_attn"] + p["b_attn"]
    q, k, v = jnp.split(qkv, 3, axis=-1)
    q = q.reshape(B, T, n_head, D).transpose(0, 2, 1, 3)
    k = k.reshape(B, T, n_head, D).transpose(0, 2, 1, 3)
    v = v.reshape(B, T, n_head, D).transpose(0, 2, 1, 3)
    att = jnp.einsum("bhtd,bhsd->bhts", q, k) / math.sqrt(D)
    mask = jnp.tril(jnp.ones((T, T), bool))
    att = jnp.where(mask, att, -jnp.inf)
    att = jax.nn.softmax(att, axis=-1)
    y = jnp.einsum("bhts,bhsd->bhtd", att, v)
    y = y.transpose(0, 2, 1, 3).reshape(B, T, C)
    y = y @ p["w_cproj"] + p["b_cproj"]
    x1 = x + y

    xh2 = ln(x1, p["ln2_w"], p["ln2_b"])
    hid = xh2 @ p["w_fc"] + p["b_fc"]
    c = math.sqrt(2.0 / math.pi)
    hid = 0.5 * hid * (1.0 + jnp.tanh(c * (hid + 0.044715 * hid ** 3)))
    out = hid @ p["w_mproj"] + p["b_mproj"]
    return x1 + out


# ----------------------------------- main ------------------------------------

if __name__ == "__main__":
    # small but lane-aligned GPT-2 style config (C = 128 lanes, 2 q-tiles, 3
    # triangular kv steps per batch element)
    B, T, C, n_head = 2, 256, 128, 4

    key = jax.random.PRNGKey(0)
    keys = jax.random.split(key, 12)

    scale = 0.02
    params = {
        "ln1_w": 1.0 + 0.1 * jax.random.normal(keys[8], (1, C), jnp.float32),
        "ln1_b": 0.1 * jax.random.normal(keys[9], (1, C), jnp.float32),
        "w_attn": scale * jax.random.normal(keys[0], (C, 3 * C), jnp.float32),
        "b_attn": scale * jax.random.normal(keys[1], (1, 3 * C), jnp.float32),
        "w_cproj": scale * jax.random.normal(keys[2], (C, C), jnp.float32),
        "b_cproj": scale * jax.random.normal(keys[3], (1, C), jnp.float32),
        "ln2_w": 1.0 + 0.1 * jax.random.normal(keys[10], (1, C), jnp.float32),
        "ln2_b": 0.1 * jax.random.normal(keys[11], (1, C), jnp.float32),
        "w_fc": scale * jax.random.normal(keys[4], (C, 4 * C), jnp.float32),
        "b_fc": scale * jax.random.normal(keys[5], (1, 4 * C), jnp.float32),
        "w_mproj": scale * jax.random.normal(keys[6], (4 * C, C), jnp.float32),
        "b_mproj": scale * jax.random.normal(keys[7], (1, C), jnp.float32),
    }

    x = jax.random.normal(jax.random.PRNGKey(42), (B, T, C), jnp.float32)

    out = gpt2_block(x, params, n_head, tile_t=128)
    out = jax.block_until_ready(out)

    ref = gpt2_block_ref(x, params, n_head)
    assert out.shape == (B, T, C)
    # bf16 matmul operands (f32 accumulation) -> loosened tolerance vs f32 reference
    assert jnp.allclose(out, ref, atol=2e-2, rtol=2e-2), \
        "Pallas output mismatch vs JAX reference"

    print("KERNEL_OK")
</pallas_src>

<mosaic_0001>
module attributes {stable_mosaic.version = 11 : i64} {
  func.func @qkv_kernel(%arg0: i32, %arg1: i32, %arg2: memref<1x128x128xf32, #tpu.memory_space<vmem>>, %arg3: memref<1x128xf32, #tpu.memory_space<vmem>>, %arg4: memref<1x128xf32, #tpu.memory_space<vmem>>, %arg5: memref<128x384xbf16, #tpu.memory_space<vmem>>, %arg6: memref<1x384xf32, #tpu.memory_space<vmem>>, %arg7: memref<1x128x128xbf16, #tpu.memory_space<vmem>>, %arg8: memref<1x4x32x128xbf16, #tpu.memory_space<vmem>>, %arg9: memref<1x4x128x32xbf16, #tpu.memory_space<vmem>>) attributes {dimension_semantics = [#tpu.dimension_semantics<parallel>, #tpu.dimension_semantics<parallel>], iteration_bounds = array<i64: 2, 2>, scalar_prefetch = 0 : i64, scratch_operands = 0 : i64, tpu.core_type = #tpu.core_type<tc>, window_params = [{transform_indices = @transform_0, window_bounds = array<i64: 1, 128, 128>}, {pipeline_mode = #tpu.pipeline_mode<synchronous>, transform_indices = @transform_1, window_bounds = array<i64: 1, 128>}, {pipeline_mode = #tpu.pipeline_mode<synchronous>, transform_indices = @transform_2, window_bounds = array<i64: 1, 128>}, {pipeline_mode = #tpu.pipeline_mode<synchronous>, transform_indices = @transform_3, window_bounds = array<i64: 128, 384>}, {pipeline_mode = #tpu.pipeline_mode<synchronous>, transform_indices = @transform_4, window_bounds = array<i64: 1, 384>}, {transform_indices = @transform_5, window_bounds = array<i64: 1, 128, 128>}, {transform_indices = @transform_6, window_bounds = array<i64: 1, 4, 32, 128>}, {transform_indices = @transform_7, window_bounds = array<i64: 1, 4, 128, 32>}]} {
    %c0 = arith.constant 0 : index
    %c0_0 = arith.constant 0 : index
    %c0_1 = arith.constant 0 : index
    %0 = vector.load %arg2[%c0, %c0_0, %c0_1] : memref<1x128x128xf32, #tpu.memory_space<vmem>>, vector<1x128x128xf32>
    %1 = vector.shape_cast %0 : vector<1x128x128xf32> to vector<128x128xf32>
    %c0_2 = arith.constant 0 : index
    %c0_3 = arith.constant 0 : index
    %2 = vector.load %arg3[%c0_2, %c0_3] : memref<1x128xf32, #tpu.memory_space<vmem>>, vector<1x128xf32>
    %c0_4 = arith.constant 0 : index
    %c0_5 = arith.constant 0 : index
    %3 = vector.load %arg4[%c0_4, %c0_5] : memref<1x128xf32, #tpu.memory_space<vmem>>, vector<1x128xf32>
    %cst = arith.constant dense<0.000000e+00> : vector<128xf32>
    %4 = vector.multi_reduction <add>, %1, %cst [1] : vector<128x128xf32> to vector<128xf32>
    %5 = vector.shape_cast %4 : vector<128xf32> to vector<128x1xf32>
    %cst_6 = arith.constant 1.280000e+02 : f32
    %6 = vector.broadcast %cst_6 : f32 to vector<128x1xf32>
    %7 = arith.divf %5, %6 : vector<128x1xf32>
    %8 = vector.broadcast %7 : vector<128x1xf32> to vector<128x128xf32>
    %9 = arith.subf %1, %8 : vector<128x128xf32>
    %10 = arith.mulf %9, %9 : vector<128x128xf32>
    %cst_7 = arith.constant dense<0.000000e+00> : vector<128xf32>
    %11 = vector.multi_reduction <add>, %10, %cst_7 [1] : vector<128x128xf32> to vector<128xf32>
    %12 = vector.shape_cast %11 : vector<128xf32> to vector<128x1xf32>
    %cst_8 = arith.constant 1.280000e+02 : f32
    %13 = vector.broadcast %cst_8 : f32 to vector<128x1xf32>
    %14 = arith.divf %12, %13 : vector<128x1xf32>
    %cst_9 = arith.constant 9.99999974E-6 : f32
    %15 = vector.broadcast %cst_9 : f32 to vector<128x1xf32>
    %16 = arith.addf %14, %15 : vector<128x1xf32>
    %17 = math.rsqrt %16 : vector<128x1xf32>
    %18 = vector.broadcast %17 : vector<128x1xf32> to vector<128x128xf32>
    %19 = arith.mulf %9, %18 : vector<128x128xf32>
    %20 = vector.broadcast %2 : vector<1x128xf32> to vector<128x128xf32>
    %21 = arith.mulf %19, %20 : vector<128x128xf32>
    %22 = vector.broadcast %3 : vector<1x128xf32> to vector<128x128xf32>
    %23 = arith.addf %21, %22 : vector<128x128xf32>
    %24 = arith.truncf %23 : vector<128x128xf32> to vector<128x128xbf16>
    %c0_10 = arith.constant 0 : index
    %c0_11 = arith.constant 0 : index
    %25 = vector.load %arg5[%c0_10, %c0_11] : memref<128x384xbf16, #tpu.memory_space<vmem>>, vector<128x384xbf16>
    %cst_12 = arith.constant dense<0.000000e+00> : vector<128x384xf32>
    %26 = tpu.matmul %24, %25, %cst_12 {dimension_numbers = #tpu.dot_dimension_numbers<[1], [0], [0], [1], [0, 0, 1, 1], [], []>} : vector<128x128xbf16>, vector<128x384xbf16>, vector<128x384xf32> -> vector<128x384xf32>
    %c0_13 = arith.constant 0 : index
    %c0_14 = arith.constant 0 : index
    %27 = vector.load %arg6[%c0_13, %c0_14] : memref<1x384xf32, #tpu.memory_space<vmem>>, vector<1x384xf32>
    %28 = vector.broadcast %27 : vector<1x384xf32> to vector<128x384xf32>
    %29 = arith.addf %26, %28 : vector<128x384xf32>
    %30 = vector.extract_strided_slice %29 {offsets = [0, 0], sizes = [128, 128], strides = [1, 1]} : vector<128x384xf32> to vector<128x128xf32>
    %cst_15 = arith.constant 0.176776692 : f32
    %31 = vector.broadcast %cst_15 : f32 to vector<128x128xf32>
    %32 = arith.mulf %30, %31 : vector<128x128xf32>
    %33 = arith.truncf %32 : vector<128x128xf32> to vector<128x128xbf16>
    %c0_16 = arith.constant 0 : index
    %c0_17 = arith.constant 0 : index
    %c0_18 = arith.constant 0 : index
    %34 = vector.load %arg7[%c0_16, %c0_17, %c0_18] : memref<1x128x128xbf16, #tpu.memory_space<vmem>>, vector<1x128x128xbf16>
    %35 = vector.shape_cast %34 : vector<1x128x128xbf16> to vector<128x128xbf16>
    %36 = vector.shape_cast %33 : vector<128x128xbf16> to vector<1x128x128xbf16>
    tpu.vector_store %arg7[%c0_16, %c0_17, %c0_18], %36 {strides = array<i32>} : memref<1x128x128xbf16, #tpu.memory_space<vmem>>, vector<1x128x128xbf16>,
    %37 = vector.extract_strided_slice %29 {offsets = [0, 128], sizes = [128, 128], strides = [1, 1]} : vector<128x384xf32> to vector<128x128xf32>
    %38 = tpu.transpose %37, [1, 0] : vector<128x128xf32> -> vector<128x128xf32>
    %39 = arith.truncf %38 : vector<128x128xf32> to vector<128x128xbf16>
    %40 = vector.shape_cast %39 : vector<128x128xbf16> to vector<4x32x128xbf16>
    %c0_19 = arith.constant 0 : index
    %c0_20 = arith.constant 0 : index
    %c0_21 = arith.constant 0 : index
    %c0_22 = arith.constant 0 : index
    %41 = vector.load %arg8[%c0_19, %c0_20, %c0_21, %c0_22] : memref<1x4x32x128xbf16, #tpu.memory_space<vmem>>, vector<1x4x32x128xbf16>
    %42 = vector.shape_cast %41 : vector<1x4x32x128xbf16> to vector<4x32x128xbf16>
    %43 = vector.shape_cast %40 : vector<4x32x128xbf16> to vector<1x4x32x128xbf16>
    tpu.vector_store %arg8[%c0_19, %c0_20, %c0_21, %c0_22], %43 {strides = array<i32>} : memref<1x4x32x128xbf16, #tpu.memory_space<vmem>>, vector<1x4x32x128xbf16>,
    %44 = vector.extract_strided_slice %29 {offsets = [0, 256], sizes = [128, 128], strides = [1, 1]} : vector<128x384xf32> to vector<128x128xf32>
    %45 = vector.extract_strided_slice %44 {offsets = [0, 0], sizes = [128, 32], strides = [1, 1]} : vector<128x128xf32> to vector<128x32xf32>
    %46 = arith.truncf %45 : vector<128x32xf32> to vector<128x32xbf16>
    %c0_23 = arith.constant 0 : index
    %c0_24 = arith.constant 0 : index
    %c0_25 = arith.constant 0 : index
    %c0_26 = arith.constant 0 : index
    %47 = vector.load %arg9[%c0_23, %c0_24, %c0_25, %c0_26] : memref<1x4x128x32xbf16, #tpu.memory_space<vmem>>, vector<1x1x128x32xbf16>
    %48 = vector.shape_cast %47 : vector<1x1x128x32xbf16> to vector<128x32xbf16>
    %49 = vector.shape_cast %46 : vector<128x32xbf16> to vector<1x1x128x32xbf16>
    tpu.vector_store %arg9[%c0_23, %c0_24, %c0_25, %c0_26], %49 {strides = array<i32>} : memref<1x4x128x32xbf16, #tpu.memory_space<vmem>>, vector<1x1x128x32xbf16>,
    %50 = vector.extract_strided_slice %44 {offsets = [0, 32], sizes = [128, 32], strides = [1, 1]} : vector<128x128xf32> to vector<128x32xf32>
    %51 = arith.truncf %50 : vector<128x32xf32> to vector<128x32xbf16>
    %c0_27 = arith.constant 0 : index
    %c1 = arith.constant 1 : index
    %c0_28 = arith.constant 0 : index
    %c0_29 = arith.constant 0 : index
    %52 = vector.load %arg9[%c0_27, %c1, %c0_28, %c0_29] : memref<1x4x128x32xbf16, #tpu.memory_space<vmem>>, vector<1x1x128x32xbf16>
    %53 = vector.shape_cast %52 : vector<1x1x128x32xbf16> to vector<128x32xbf16>
    %54 = vector.shape_cast %51 : vector<128x32xbf16> to vector<1x1x128x32xbf16>
    tpu.vector_store %arg9[%c0_27, %c1, %c0_28, %c0_29], %54 {strides = array<i32>} : memref<1x4x128x32xbf16, #tpu.memory_space<vmem>>, vector<1x1x128x32xbf16>,
    %55 = vector.extract_strided_slice %44 {offsets = [0, 64], sizes = [128, 32], strides = [1, 1]} : vector<128x128xf32> to vector<128x32xf32>
    %56 = arith.truncf %55 : vector<128x32xf32> to vector<128x32xbf16>
    %c0_30 = arith.constant 0 : index
    %c2 = arith.constant 2 : index
    %c0_31 = arith.constant 0 : index
    %c0_32 = arith.constant 0 : index
    %57 = vector.load %arg9[%c0_30, %c2, %c0_31, %c0_32] : memref<1x4x128x32xbf16, #tpu.memory_space<vmem>>, vector<1x1x128x32xbf16>
    %58 = vector.shape_cast %57 : vector<1x1x128x32xbf16> to vector<128x32xbf16>
    %59 = vector.shape_cast %56 : vector<128x32xbf16> to vector<1x1x128x32xbf16>
    tpu.vector_store %arg9[%c0_30, %c2, %c0_31, %c0_32], %59 {strides = array<i32>} : memref<1x4x128x32xbf16, #tpu.memory_space<vmem>>, vector<1x1x128x32xbf16>,
    %60 = vector.extract_strided_slice %44 {offsets = [0, 96], sizes = [128, 32], strides = [1, 1]} : vector<128x128xf32> to vector<128x32xf32>
    %61 = arith.truncf %60 : vector<128x32xf32> to vector<128x32xbf16>
    %c0_33 = arith.constant 0 : index
    %c3 = arith.constant 3 : index
    %c0_34 = arith.constant 0 : index
    %c0_35 = arith.constant 0 : index
    %62 = vector.load %arg9[%c0_33, %c3, %c0_34, %c0_35] : memref<1x4x128x32xbf16, #tpu.memory_space<vmem>>, vector<1x1x128x32xbf16>
    %63 = vector.shape_cast %62 : vector<1x1x128x32xbf16> to vector<128x32xbf16>
    %64 = vector.shape_cast %61 : vector<128x32xbf16> to vector<1x1x128x32xbf16>
    tpu.vector_store %arg9[%c0_33, %c3, %c0_34, %c0_35], %64 {strides = array<i32>} : memref<1x4x128x32xbf16, #tpu.memory_space<vmem>>, vector<1x1x128x32xbf16>,
    return
  }
  func.func @transform_0(%arg0: i32, %arg1: i32) -> (i32, i32, i32) {
    %c0_i32 = arith.constant 0 : i32
    %c0_i32_0 = arith.constant 0 : i32
    return %arg0, %arg1, %c0_i32 : i32, i32, i32
  }
  func.func @transform_1(%arg0: i32, %arg1: i32) -> (i32, i32) {
    %c0_i32 = arith.constant 0 : i32
    %c0_i32_0 = arith.constant 0 : i32
    %c0_i32_1 = arith.constant 0 : i32
    return %c0_i32, %c0_i32_0 : i32, i32
  }
  func.func @transform_2(%arg0: i32, %arg1: i32) -> (i32, i32) {
    %c0_i32 = arith.constant 0 : i32
    %c0_i32_0 = arith.constant 0 : i32
    %c0_i32_1 = arith.constant 0 : i32
    return %c0_i32, %c0_i32_0 : i32, i32
  }
  func.func @transform_3(%arg0: i32, %arg1: i32) -> (i32, i32) {
    %c0_i32 = arith.constant 0 : i32
    %c0_i32_0 = arith.constant 0 : i32
    %c0_i32_1 = arith.constant 0 : i32
    return %c0_i32, %c0_i32_0 : i32, i32
  }
  func.func @transform_4(%arg0: i32, %arg1: i32) -> (i32, i32) {
    %c0_i32 = arith.constant 0 : i32
    %c0_i32_0 = arith.constant 0 : i32
    %c0_i32_1 = arith.constant 0 : i32
    return %c0_i32, %c0_i32_0 : i32, i32
  }
  func.func @transform_5(%arg0: i32, %arg1: i32) -> (i32, i32, i32) {
    %c0_i32 = arith.constant 0 : i32
    %c0_i32_0 = arith.constant 0 : i32
    return %arg0, %arg1, %c0_i32 : i32, i32, i32
  }
  func.func @transform_6(%arg0: i32, %arg1: i32) -> (i32, i32, i32, i32) {
    %c0_i32 = arith.constant 0 : i32
    %c0_i32_0 = arith.constant 0 : i32
    %c0_i32_1 = arith.constant 0 : i32
    return %arg0, %c0_i32, %c0_i32_0, %arg1 : i32, i32, i32, i32
  }
  func.func @transform_7(%arg0: i32, %arg1: i32) -> (i32, i32, i32, i32) {
    %c0_i32 = arith.constant 0 : i32
    %c0_i32_0 = arith.constant 0 : i32
    %c0_i32_1 = arith.constant 0 : i32
    return %arg0, %c0_i32, %arg1, %c0_i32_0 : i32, i32, i32, i32
  }
}

</mosaic_0001>

<bundles_post_ra>
// kernel: tpu_custom_call.1
= control target key start
LH: loop header
LB: loop body
LE: loop exit
PB: predicated region body
PF: predicated region fallthrough
CT: control target
= control target key end

     0   :  { %s3646_s0 = inlined_call_operand.hbm [shape: f32[2,256,128], index: 0, kind: input, shape index: {}]   ;;  %s3647_s1 = inlined_call_operand.hbm [shape: f32[1,128], index: 1, kind: input, shape index: {}]   ;;  %s3648_s2 = inlined_call_operand.hbm [shape: f32[1,128], index: 2, kind: input, shape index: {}]   ;;  %s3649_s3 = inlined_call_operand.hbm [shape: bf16[128,384], index: 3, kind: input, shape index: {}]   ;;  %s3650_s4 = inlined_call_operand.hbm [shape: f32[1,384], index: 4, kind: input, shape index: {}]   ;;  %s3651_s5 = inlined_call_operand.hbm [shape: bf16[2,256,128], index: 5, kind: output, shape index: {0}]   ;;  %s3652_s6 = inlined_call_operand.hbm [shape: bf16[2,4,32,256], index: 6, kind: output, shape index: {1}]   ;;  %s3653_s7 = inlined_call_operand.hbm [shape: bf16[2,4,256,32], index: 7, kind: output, shape index: {2}]  }
   0x1   :  { %3663 = sst [smem:[#allocation25_spill]] %s3647_s1 }
   0x2   :  { %3664 = sst [smem:[#allocation26_spill]] %s3648_s2 }
   0x3   :  { %3665 = sst [smem:[#allocation27_spill]] %s3649_s3 }
   0x4   :  { %3666 = sst [smem:[#allocation28_spill]] %s3650_s4 }
   0x5   :  { %3667 = sst [smem:[#allocation29_spill]] %s3652_s6 }
   0x6   :  { %3668 = sst [smem:[#allocation30_spill]] %s3653_s7 }
   0x7   :  { %13 = vsyncpa [#allocation3], 0 }
   0x8   :  { %15 = vsyncpa [#allocation3 + $0x1], 0 }
   0x9   :  { %16 = vsyncpa [#allocation6], 0 }
   0xa   :  { %17 = vsyncpa [#allocation9], 0 }
   0xb   :  { %18 = vsyncpa [#allocation4], 0 }
   0xc   :  { %20 = vsyncpa [#allocation4 + $0x1], 0 }
   0xd   :  { %21 = vsyncpa [#allocation13], 0 }
   0xe   :  { %23 = vsyncpa [#allocation13 + $0x1], 0  ;;  %s2703_s24 = smov 0   ;;  %s2705_s25 = smov 0  }
   0xf   :  { %s2707_s26 = smov 0   ;;  %s2709_s27 = smov 0  }
  0x10   :  { %s2711_s28 = smov 0   ;;  %s2713_s29 = smov 0  }
  0x11   :  { %s2715_s30 = smov 0   ;;  %s2717_s8 = smov 0  }
  0x12 LB: > { %3669 = sst [smem:[#allocation22_spill]] %s2609_s24  ;;  %s2744_s9 = sadd.s32 4294967295, %s2637_s8   ;;  %s2637_s8 = sphi %s2717_s8, %s29_s8   ;;  %s2633_s30 = sphi %s2715_s30, %s3705_s30   ;;  %s2629_s29 = sphi %s2713_s29, %s3704_s29   ;;  %s2625_s28 = sphi %s2711_s28, %s3703_s28   ;;  %s2621_s27 = sphi %s2709_s27, %s3702_s27   ;;  %s2617_s26 = sphi %s2707_s26, %s3701_s26   ;;  %s2613_s25 = sphi %s2705_s25, %s3700_s25   ;;  %s2609_s24 = sphi %s2703_s24, %s3699_s24  }
  0x13   : > { %s3654_s10 = sadd.s32 4294967294, %s2637_s8   ;;  %p63_p0 = scmp.ne.s32.totalorder %s2613_s25, %s2609_s24 }
  0x14   : > { %p3656_p1 = scmp.eq.s32.totalorder %s2744_s9, 0  ;;  %p179_p3 = scmp.eq.s32.totalorder %s3654_s10, 3 }
  0x15   : > { %p1797_p5 = scmp.ge.s32.totalorder %s2637_s8, 1  ;;  %p242_p7 = scmp.lt.s32.totalorder %s2637_s8, 5 }
  0x16   : > { %p2755_p4 = por %p3656_p1, %p63_p0  ;;  %p2760_p6 = por %p179_p3, %p63_p0 }
  0x17   : > { %p2765_p8 = pnand %p1797_p5, %p242_p7  ;;  %s2639_s14 = smov [#allocation5]  }
  0x18   : > { %s3670_s11 = scalar_select %p2755_p4, 1, 0 }
  0x19   : > { %s3671_s12 = scalar_select %p2760_p6, 1, 0 }
  0x1a   : > { %s3673_s13 = scalar_select %p2765_p8, 1, 0 }
  0x1b   : > { %3672 = sst [smem:[#allocation23_spill]] %s3671_s12  ;;  %s255_s15 = sshll.u32 %s2639_s14, 4  ;;  %s256_s15 = int_to_ptr.vmem [resolvable:$true] %s255_s15 }
  0x1c   : > { %p2171_p9 = pneg %p2765_p8  ;;  %s2640_s16 = smov [#allocation8]  }
  0x1d   : > { %s276_s17 = sshll.u32 %s2640_s16, 4  ;;  %s2641_s19 = smov [#allocation7]   ;;  %s2777_s17 = int_to_ptr.vmem [resolvable:$true] %s276_s17 }
  0x1e   : > { %p2773_p10 = pnand %p2171_p9, %p3656_p1  ;;  %s2779_s20 = sshll.u32 %s2641_s19, 4  ;;  %s267_s20 = int_to_ptr.vmem [resolvable:$true] %s2779_s20 }
  0x1f   : > { %s3675_s1 = sld [smem:[#allocation25_spill]] }
  0x20   : > { %p2789_p12 = pneg %p2773_p10 }
  0x25   : > { %s2357_s23 = scalar_lea.hbm %s3675_s1, 16 }
  0x26   : > { %p2358_p11 = scmp.ne.s32.totalorder %s3675_s1, %s2357_s23  ;;  %p2364_p3 = scmp.lt.u32.totalorder %s2357_s23, %s3675_s1 }
  0x28   : > { %p2360_p13 = pnand %p2789_p12, %p2358_p11 }
  0x2a   : > { %p2361_p0 = pneg %p2360_p13 }
  0x2c   : > { %p2366_p5 = pnand %p2364_p3, %p2361_p0 }
  0x2e   : > { %2369 = shalt.err (!%p2366_p5)
}
  0x2f   : > { %s2370_s21 = scalar_lea.vmem %s256_s15, 16  ;;  %s2377_s10 = scalar_lea.vmem %s256_s15, 32 }
  0x30   : > { %p2371_p7 = scmp.ne.s32.totalorder %s256_s15, %s2370_s21  ;;  %p2378_p2 = scmp.lt.s32.totalorder %s256_s15, %s256_s15 }
  0x31   : > { %p2379_p6 = scmp.lt.s32.totalorder %s2377_s10, %s2370_s21 }
  0x32   : > { %p2373_p9 = pnand %p2371_p7, %p2789_p12 }
  0x33   : > { %p2380_p4 = por %p2379_p6, %p2378_p2 }
  0x34   : > { %p2374_p1 = pneg %p2373_p9 }
  0x36   : > { %p2381_p8 = pnand %p2380_p4, %p2374_p1 }
  0x38   : > { %2384 = shalt.err (!%p2381_p8)
}
  0x39   : > { %2174 = dma.hbm_to_vmem [thread:$0]  (!%p2773_p10), %s3675_s1, 16, %s256_s15, [#allocation6]  }
  0x3a   : > { %s3677_s3 = sld [smem:[#allocation27_spill]] }
  0x40   : > { %s2385_s19 = scalar_lea.hbm %s3677_s3, 3072 }
  0x41   : > { %p2386_p11 = scmp.ne.s32.totalorder %s3677_s3, %s2385_s19  ;;  %p2392_p1 = scmp.lt.u32.totalorder %s2385_s19, %s3677_s3 }
  0x43   : > { %p2388_p13 = pnand %p2386_p11, %p2789_p12 }
  0x45   : > { %p2389_p2 = pneg %p2388_p13 }
  0x47   : > { %p2394_p4 = pnand %p2392_p1, %p2389_p2 }
  0x49   : > { %2397 = shalt.err (!%p2394_p4)
}
  0x4a   : > { %s2398_s15 = scalar_lea.vmem %s2777_s17, 3072  ;;  %p2406_p3 = scmp.lt.s32.totalorder %s2777_s17, %s2777_s17 }
  0x4b   : > { %p2399_p6 = scmp.ne.s32.totalorder %s2777_s17, %s2398_s15  ;;  %p2407_p5 = scmp.lt.s32.totalorder %s2398_s15, %s2398_s15 }
  0x4d   : > { %p2401_p8 = pnand %p2399_p6, %p2789_p12  ;;  %p2408_p7 = por %p2407_p5, %p2406_p3 }
  0x4f   : > { %p2402_p0 = pneg %p2401_p8 }
  0x51   : > { %p2409_p9 = pnand %p2408_p7, %p2402_p0 }
  0x53   : > { %2412 = shalt.err (!%p2409_p9)
}
  0x54   : > { %s2642_s7 = smov 192   ;;  %s2643_s24 = smov 12  }
  0x55   : > { %2180 = dma.hbm_to_vmem [thread:$0]  (!%p2773_p10), %s3677_s3, 3072, %s2777_s17, [#allocation9], %s2642_s7, %s2642_s7, %s2643_s24  }
  0x56   : > { %s3678_s2 = sld [smem:[#allocation26_spill]] }
  0x5c   : > { %s2413_s19 = scalar_lea.hbm %s3678_s2, 16 }
  0x5d   : > { %p2414_p11 = scmp.ne.s32.totalorder %s3678_s2, %s2413_s19  ;;  %p2420_p1 = scmp.lt.u32.totalorder %s2413_s19, %s3678_s2 }
  0x5f   : > { %p2416_p13 = pnand %p2414_p11, %p2789_p12 }
  0x61   : > { %p2417_p2 = pneg %p2416_p13 }
  0x63   : > { %p2422_p4 = pnand %p2420_p1, %p2417_p2 }
  0x65   : > { %2425 = shalt.err (!%p2422_p4)
}
  0x66   : > { %s2426_s22 = scalar_lea.vmem %s267_s20, 16  ;;  %s2433_s17 = scalar_lea.vmem %s267_s20, 32 }
  0x67   : > { %p2427_p6 = scmp.ne.s32.totalorder %s267_s20, %s2426_s22  ;;  %p2434_p3 = scmp.lt.s32.totalorder %s267_s20, %s267_s20 }
  0x68   : > { %p2435_p5 = scmp.lt.s32.totalorder %s2433_s17, %s2426_s22 }
  0x69   : > { %p2429_p8 = pnand %p2427_p6, %p2789_p12 }
  0x6a   : > { %p2436_p7 = por %p2435_p5, %p2434_p3 }
  0x6b   : > { %p2430_p0 = pneg %p2429_p8 }
  0x6d   : > { %p2437_p9 = pnand %p2436_p7, %p2430_p0 }
  0x6f   : > { %2440 = shalt.err (!%p2437_p9)
}
  0x70   : > { %2177 = dma.hbm_to_vmem [thread:$0]  (!%p2773_p10), %s3678_s2, 16, %s267_s20, [#allocation6]  }
  0x71   : > { %s2644_s1 = smov [#allocation10]   ;;  %s3679_s4 = sld [smem:[#allocation28_spill]] }
  0x72   : > { %s290_s14 = sshll.u32 %s2644_s1, 4  ;;  %s291_s14 = int_to_ptr.vmem [resolvable:$true] %s290_s14 }
  0x77   : > { %s2441_s19 = scalar_lea.hbm %s3679_s4, 48 }
  0x78   : > { %p2442_p11 = scmp.ne.s32.totalorder %s3679_s4, %s2441_s19  ;;  %p2448_p1 = scmp.lt.u32.totalorder %s2441_s19, %s3679_s4 }
  0x7a   : > { %p2444_p13 = pnand %p2442_p11, %p2789_p12 }
  0x7c   : > { %p2445_p2 = pneg %p2444_p13 }
  0x7e   : > { %p2450_p4 = pnand %p2448_p1, %p2445_p2 }
  0x80   : > { %2453 = shalt.err (!%p2450_p4)
}
  0x81   : > { %s2454_s20 = scalar_lea.vmem %s291_s14, 48  ;;  %s2461_s17 = scalar_lea.vmem %s291_s14, 64 }
  0x82   : > { %p2455_p6 = scmp.ne.s32.totalorder %s291_s14, %s2454_s20  ;;  %p2462_p3 = scmp.lt.s32.totalorder %s291_s14, %s291_s14 }
  0x83   : > { %p2463_p5 = scmp.lt.s32.totalorder %s2461_s17, %s2454_s20 }
  0x84   : > { %p2457_p8 = pnand %p2455_p6, %p2789_p12 }
  0x85   : > { %p2464_p7 = por %p2463_p5, %p2462_p3 }
  0x86   : > { %p2458_p0 = pneg %p2457_p8 }
  0x88   : > { %p2465_p9 = pnand %p2464_p7, %p2458_p0 }
  0x8a   : > { %2468 = shalt.err (!%p2465_p9)
}
  0x8b   : > { %2183 = dma.hbm_to_vmem [thread:$0]  (!%p2773_p10), %s3679_s4, 48, %s291_s14, [#allocation9]  }
  0x8c   : > { %s38_s16 = sadd.s32 1, %s2629_s29  ;;  %s41_s1 = sadd.s32 1, %s2633_s30 }
  0x8d   : > { %p39_p12 = scmp.ge.s32.totalorder %s38_s16, 2  ;;  %s50_s18 = sadd.s32 1, %s2617_s26 }
  0x8e   : > { %p57_p11 = scmp.ne.s32.totalorder %s2617_s26, %s2613_s25  ;;  %p58_p13 = scmp.eq.s32.totalorder %s2637_s8, 0 }
  0x8f   : > { %s3707_s16 = smov (%p39_p12, %s38_s16), 0  ;;  %s3709_s1 = smov (!%p39_p12, %s41_s1), %s2633_s30 }
  0x90   : > { %3680 = sst [smem:[#allocation24_spill]] %s3707_s16  ;;  %s46_s12 = ssub.s32 %s2629_s29, %s3707_s16 }
  0x91   : > { %p2876_p2 = por %p58_p13, %p57_p11  ;;  %p43_p10 = scmp.ge.s32.totalorder %s3709_s1, 2 }
  0x92   : > { %p3682_p1 = scmp.eq.s32.totalorder %s2744_s9, 3  ;;  %p2202_p6 = scmp.lt.s32.totalorder %s2637_s8, 4 }
  0x93   : > { %s301_s19 = sand.u32 1, %s2617_s26   ;;  %s3711_s1 = smov (%p43_p10, %s3709_s1), 0 }
  0x94   : > { %p2882_p4 = por %p3682_p1, %p57_p11  ;;  %s1803_s21 = sshll.u32 %s301_s19, 7 }
  0x95   : > { %s45_s10 = ssub.s32 %s2633_s30, %s3711_s1  ;;  %s1804_s22 = sshll.u32 %s2629_s29, 4 }
  0x96   : > { %s47_s15 = sor.u32 %s46_s12, %s45_s10  ;;  %s1805_s20 = sshll.u32 %s2633_s30, 5 }
  0x97   : > { %p48_p8 = scmp.eq.s32.totalorder %s47_s15, 0  ;;  %s311_s17 = sadd.s32 %s1805_s20, %s1804_s22 }
  0x98   : > { %s305_s7 = scalar_lea.vmem [#allocation2], %s1803_s21  ;;  %s1806_s3 = sshll.u32 %s311_s17, 7 }
  0x99   : > { %s314_s24 = sshll.u32 %s305_s7, 4  ;;  %s2902_s6 = scalar_lea.hbm %s3646_s0, %s1806_s3  ;;  %s2897_s24 = int_to_ptr.vmem [resolvable:$true] %s314_s24 }
  0x9a   : > { %s2895_s2 = scalar_select %p48_p8, %s2617_s26, %s50_s18  }
  0x9b   : > { %p2908_p0 = pnand %p2202_p6, %p2876_p2  ;;  %s2912_s18 = scalar_lea.sflag [#allocation3], %s301_s19 }
  0x9c   : > { %s2469_s21 = scalar_lea.hbm %s2902_s6, 2048  ;;  %s2474_s16 = scalar_lea.hbm %s3646_s0, 8192 }
  0x9d   : > { %p2470_p3 = scmp.ne.s32.totalorder %s2902_s6, %s2469_s21  ;;  %p2471_p5 = pneg %p2908_p0 }
  0x9e   : > { %p2475_p12 = scmp.lt.u32.totalorder %s2902_s6, %s3646_s0  ;;  %p2476_p11 = scmp.lt.u32.totalorder %s2474_s16, %s2469_s21 }
  0x9f   : > { %p2472_p7 = pnand %p2471_p5, %p2470_p3  ;;  %p2478_p2 = scmp.lt.u32.totalorder %s2469_s21, %s2902_s6 }
  0xa0   : > { %p2477_p13 = por %p2476_p11, %p2475_p12 }
  0xa1   : > { %p2473_p9 = pneg %p2472_p7 }
  0xa2   : > { %p2479_p10 = por %p2478_p2, %p2477_p13 }
  0xa4   : > { %p2480_p1 = pnand %p2479_p10, %p2473_p9 }
  0xa6   : > { %2483 = shalt.err (!%p2480_p1)
}
  0xa7   : > { %s2484_s19 = scalar_lea.vmem %s2897_s24, 2048  ;;  %s2645_s15 = smov [#allocation2]  }
  0xa8   : > { %p2485_p6 = scmp.ne.s32.totalorder %s2897_s24, %s2484_s19  ;;  %s2489_s22 = sshll.u32 %s2645_s15, 4  ;;  %s2490_s22 = int_to_ptr.vmem [resolvable:$false] %s2489_s22 }
  0xa9   : > { %s2491_s20 = scalar_lea.vmem %s2490_s22, 4096  ;;  %p2492_p7 = scmp.lt.s32.totalorder %s2897_s24, %s2490_s22 }
  0xaa   : > { %p2487_p8 = pnand %p2485_p6, %p2471_p5  ;;  %p2493_p12 = scmp.lt.s32.totalorder %s2491_s20, %s2484_s19 }
  0xac   : > { %p2488_p3 = pneg %p2487_p8  ;;  %p2494_p11 = por %p2493_p12, %p2492_p7 }
  0xae   : > { %p2495_p13 = pnand %p2494_p11, %p2488_p3 }
  0xb0   : > { %2498 = shalt.err (!%p2495_p13)
}
  0xb1   : > { %s2646_s17 = smov 128   ;;  %s2647_s7 = smov 8  }
  0xb2   : > { %2187 = dma.hbm_to_vmem [thread:$0]  (!%p2908_p0), %s2902_s6, 2048, %s2897_s24, %s2912_s18, %s2646_s17, %s2646_s17, %s2647_s7  }
  0xb3   : > { %p3685_p5 = scmp.ne.s32.totalorder %s3673_s13, 0 }
  0xb4   : > { %s2943_s21 = sand.u32 (!%p3685_p5), 1, %s2613_s25   ;;  %p3686_p9 = scmp.ne.s32.totalorder (!%p3685_p5), %s3670_s11, 0 }
  0xb5   : > { %326 = sbr.rel (%p3685_p5) target bundleno = 1035 (0x40b), region = 40  ;;  %s1808_s3 = sshll.u32 (!%p3685_p5), %s2943_s21, 7 }
  0xb6   : > { %s329_s4 = scalar_lea.sflag (!%p3685_p5), [#allocation3], %s2943_s21  ;;  %s2947_s16 = scalar_lea.vmem (!%p3685_p5), [#allocation2], %s1808_s3 }
  0xbc   : > { %2588 = dma.done.wait (%p3686_p9), %s329_s4, 2048  }
  0xbd   : > { %2590 = vsyncadd (%p3686_p9), %s329_s4, 4294965248  ;;  %p3687_p0 = scmp.eq.s32.totalorder %s2744_s9, 0 }
  0xbf   : > { %2592 = dma.done.wait (%p3687_p0), [#allocation6], 32   ;;  %p3688_p2 = pmov %p3687_p0 }
  0xc0   : > { %p3689_p10 = pmov %p3687_p0 }
  0xc1   : > { %2594 = vsyncadd (%p3688_p2), [#allocation6], 4294967264 }
  0xc2   : > { %2596 = dma.done.wait (%p3689_p10), [#allocation9], 3120   ;;  %p3690_p1 = pmov %p3687_p0 }
  0xc3   : > { %v393_v0 = vld [vmem:[%s2947_s16] sm:$0xff]  ;;  %v395_v1 = vld [vmem:[%s2947_s16 + $0x10] sm:$0xff]  ;;  %v394_v2 = vld [vmem:[%s2947_s16 + $0x8] sm:$0xff]  ;;  %s1813_s6 = sshll.u32 %s2943_s21, 6  ;;  %s1815_s11 = sshll.u32 %s2943_s21, 8  ;;  %vm1299_vm0 = vcmask 257024  }
  0xc4   : > { %2598 = vsyncadd (%p3690_p1), [#allocation9], 4294964176  ;;  %411 = vadd.xlane.f32.xlu0 %v393_v0  ;;  %415 = vadd.xlane.f32.xlu1 %v395_v1  ;;  %v396_v3 = vld [vmem:[%s2947_s16 + $0x18] sm:$0xff]  ;;  %v397_v4 = vld [vmem:[%s2947_s16 + $0x20] sm:$0xff]  ;;  %s3161_s13 = scalar_lea.vmem [#allocation11], %s1813_s6  ;;  %s3164_s24 = scalar_lea.vmem [#allocation14], %s1815_s11 }
  0xc5   : > { %v398_v5 = vld [vmem:[%s2947_s16 + $0x28] sm:$0xff]  ;;  %v399_v6 = vld [vmem:[%s2947_s16 + $0x30] sm:$0xff]  ;;  %v2969_v7 = vld [vmem:[%s2947_s16 + $0x38] sm:$0xff]  ;;  %s2649_s12 = smov 96   ;;  %s2650_s18 = smov 32  }
  0xc6   : > { %v2972_v8 = vld [vmem:[%s2947_s16 + $0x40] sm:$0xff]  ;;  %v2975_v9 = vld [vmem:[%s2947_s16 + $0x48] sm:$0xff]  ;;  %v2981_v10 = vld [vmem:[%s2947_s16 + $0x50] sm:$0xff]  ;;  %s2651_s23 = smov 64   ;;  %s1537_s10 = sshll.u32 %s3161_s13, 4  ;;  %s3432_s10 = int_to_ptr.vmem [resolvable:$true] %s1537_s10 }
  0xc7   : > { %v2984_v11 = vld [vmem:[%s2947_s16 + $0x58] sm:$0xff]  ;;  %v2989_v12 = vld [vmem:[%s2947_s16 + $0x60] sm:$0xff]  ;;  %v2992_v13 = vld [vmem:[%s2947_s16 + $0x68] sm:$0xff]  ;;  %s3662_s19 = sshll.u32 %s2621_s27, 4  ;;  %s1942_s15 = sshll.u32 %s2625_s28, 5 }
  0xc8   : > { %413 = vadd.xlane.f32.xlu0 %v394_v2  ;;  %417 = vadd.xlane.f32.xlu1 %v396_v3  ;;  %v2997_v14 = vld [vmem:[%s2947_s16 + $0x70] sm:$0xff]  ;;  %v3000_v15 = vld [vmem:[%s2947_s16 + $0x78] sm:$0xff]  ;;  %v2296_v18 = vld [vmem:[#allocation8 + $0x1c] ss:$12 sps:$4 sm:$0xff]   ;;  %s1534_s22 = sadd.s32 %s1942_s15, %s3662_s19  ;;  %s1512_s4 = scalar_lea.sflag [#allocation4], %s2943_s21 }
  0xc9   : > { %v2293_v16 = vld [vmem:[#allocation8 + $0x4] ss:$12 sps:$4 sm:$0xff]   ;;  %v2295_v17 = vld [vmem:[#allocation8] ss:$12 sps:$4 sm:$0xff]   ;;  %v2298_v19 = vld [vmem:[#allocation8 + $0x8] ss:$12 sps:$4 sm:$0xff]  }
  0xca   : > { %817 = vmatprep.subr.bf16.mxu0 %v2293_v16  ;;  %2109 = vmatprep.subr.bf16.mxu1 %v2298_v19  ;;  %v2299_v58 = vld [vmem:[#allocation8 + $0x18] ss:$12 sps:$4 sm:$0xff]   ;;  %s1943_s20 = sshll.u32 %s1534_s22, 6  ;;  %s2499_s16 = scalar_lea.vmem %s3432_s10, 1024 }
  0xcb   : > { %818 = vmatpush1.bf16.msra.mxu0 %v2295_v17  ;;  %2110 = vmatpush3.bf16.msra.mxu1 %v2298_v19  ;;  %v2306_v19 = vld [vmem:[#allocation8 + $0x38] ss:$12 sps:$4 sm:$0xff]   ;;  %s3445_s3 = scalar_lea.hbm %s3651_s5, %s1943_s20  ;;  %p2500_p6 = scmp.ne.s32.totalorder %s3432_s10, %s2499_s16 }
  0xcc   : > { %419 = vadd.xlane.f32.xlu0 %v397_v4  ;;  %421 = vadd.xlane.f32.xlu1 %v398_v5  ;;  %s2652_s11 = smov [#allocation11]  }
  0xcd   : > { %819 = vmatprep.subr.bf16.mxu0 %v2296_v18  ;;  %v2304_v18 = vld [vmem:[#allocation8 + $0x4c] ss:$12 sps:$4 sm:$0xff]   ;;  %p2501_p8 = pnand %p2500_p6, %p2882_p4 }
  0xcf   : > { %820 = vmatpush1.bf16.msra.mxu0 %v2299_v58  ;;  %p2502_p3 = pneg %p2501_p8 }
  0xd0   : > { %423 = vadd.xlane.f32.xlu0 %v399_v6  ;;  %425 = vadd.xlane.f32.xlu1 %v2969_v7 }
  0xd4   : > { %427 = vadd.xlane.f32.xlu0 %v2972_v8  ;;  %429 = vadd.xlane.f32.xlu1 %v2975_v9 }
  0xd8   : > { %431 = vadd.xlane.f32.xlu0 %v2981_v10  ;;  %433 = vadd.xlane.f32.xlu1 %v2984_v11 }
  0xdc   : > { %435 = vadd.xlane.f32.xlu0 %v2989_v12  ;;  %437 = vadd.xlane.f32.xlu1 %v2992_v13 }
  0xe0   : > { %439 = vadd.xlane.f32.xlu0 %v2997_v14  ;;  %441 = vadd.xlane.f32.xlu1 %v3000_v15 }
 0x151   : > { %v412_v20 = vpop.xlane.xlu0 %411  ;;  %v416_v21 = vpop.xlane.xlu1 %415 }
 0x152   : > { %v444_v22 = vmul.f32 0.0078125, %v412_v20  ;;  %v446_v23 = vmul.f32 0.0078125, %v416_v21 }
 0x154   : > { %v3004_v24 = vsub.f32 %v393_v0, %v444_v22  ;;  %v3006_v25 = vsub.f32 %v395_v1, %v446_v23  ;;  %v2300_v0 = vld [vmem:[#allocation8 + $0x34] ss:$12 sps:$4 sm:$0xff]  }
 0x155   : > { %v414_v26 = vpop.xlane.xlu0 %413  ;;  %v418_v27 = vpop.xlane.xlu1 %417  ;;  %v2302_v1 = vld [vmem:[#allocation8 + $0x20] ss:$12 sps:$4 sm:$0xff]   ;;  %821 = vmatprep.subr.bf16.mxu0 %v2300_v0  ;;  %v2307_v22 = vld [vmem:[#allocation8 + $0x48] ss:$12 sps:$4 sm:$0xff]  }
 0x156   : > { %v445_v28 = vmul.f32 0.0078125, %v414_v26  ;;  %v476_v29 = vmul.f32 %v3004_v24, %v3004_v24  ;;  %v447_v30 = vmul.f32 0.0078125, %v418_v27  ;;  %v478_v32 = vmul.f32 %v3006_v25, %v3006_v25  ;;  %2111 = vmatprep.subr.bf16.mxu1 %v2302_v1 }
 0x157   : > { %2112 = vmatpush3.bf16.msra.mxu1 %v2302_v1 }
 0x158   : > { %v3010_v31 = vsub.f32 %v394_v2, %v445_v28  ;;  %492 = vadd.xlane.f32.xlu0 %v476_v29  ;;  %v3014_v33 = vsub.f32 %v396_v3, %v447_v30  ;;  %2113 = vmatprep.subr.bf16.mxu1 %v2306_v19  ;;  %v2308_v29 = vld [vmem:[#allocation8 + $0x64] ss:$12 sps:$4 sm:$0xff]  }
 0x159   : > { %v420_v34 = vpop.xlane.xlu0 %419  ;;  %v422_v35 = vpop.xlane.xlu1 %421  ;;  %v2310_v30 = vld [vmem:[#allocation8 + $0x50] ss:$12 sps:$4 sm:$0xff]  }
 0x15a   : > { %v448_v36 = vmul.f32 0.0078125, %v420_v34  ;;  %v477_v37 = vmul.f32 %v3010_v31, %v3010_v31  ;;  %v449_v38 = vmul.f32 0.0078125, %v422_v35  ;;  %v479_v40 = vmul.f32 %v3014_v33, %v3014_v33  ;;  %v2314_v35 = vld [vmem:[#allocation8 + $0x68] ss:$12 sps:$4 sm:$0xff]  }
 0x15b   : > { %2114 = vmatpush3.bf16.msra.mxu1 %v2306_v19 }
 0x15c   : > { %v3018_v39 = vsub.f32 %v397_v4, %v448_v36  ;;  %496 = vadd.xlane.f32.xlu0 %v478_v32  ;;  %494 = vadd.xlane.f32.xlu1 %v477_v37  ;;  %v3022_v41 = vsub.f32 %v398_v5, %v449_v38  ;;  %v2311_v32 = vld [vmem:[#allocation8 + $0x60] ss:$12 sps:$4 sm:$0xff]   ;;  %v2315_v36 = vld [vmem:[#allocation8 + $0x78] ss:$12 sps:$4 sm:$0xff]  }
 0x15d   : > { %v424_v42 = vpop.xlane.xlu0 %423  ;;  %v426_v43 = vpop.xlane.xlu1 %425  ;;  %2115 = vmatprep.subr.bf16.mxu1 %v2310_v30  ;;  %v2316_v37 = vld [vmem:[#allocation8 + $0x94] ss:$12 sps:$4 sm:$0xff]  }
 0x15e   : > { %v450_v44 = vmul.f32 0.0078125, %v424_v42  ;;  %v480_v45 = vmul.f32 %v3018_v39, %v3018_v39  ;;  %v451_v46 = vmul.f32 0.0078125, %v426_v43  ;;  %v481_v48 = vmul.f32 %v3022_v41, %v3022_v41  ;;  %v2318_v38 = vld [vmem:[#allocation8 + $0x80] ss:$12 sps:$4 sm:$0xff]   ;;  %v2322_v43 = vld [vmem:[#allocation8 + $0x98] ss:$12 sps:$4 sm:$0xff]  }
 0x15f   : > { %2116 = vmatpush3.bf16.msra.mxu1 %v2310_v30  ;;  %v2320_v42 = vld [vmem:[#allocation8 + $0xac] ss:$12 sps:$4 sm:$0xff]  }
 0x160   : > { %v3026_v47 = vsub.f32 %v399_v6, %v450_v44  ;;  %498 = vadd.xlane.f32.xlu1 %v479_v40  ;;  %500 = vadd.xlane.f32.xlu0 %v480_v45  ;;  %v3031_v49 = vsub.f32 %v2969_v7, %v451_v46  ;;  %v2303_v7 = vld [vmem:[#allocation8 + $0x30] ss:$12 sps:$4 sm:$0xff]   ;;  %v2323_v44 = vld [vmem:[#allocation8 + $0xa8] ss:$12 sps:$4 sm:$0xff]   ;;  %v2648_v46 = vmov 0  }
 0x161   : > { %v428_v50 = vpop.xlane.xlu0 %427  ;;  %v430_v51 = vpop.xlane.xlu1 %429  ;;  %822 = vmatpush1.bf16.msra.mxu0 %v2303_v7  ;;  %2117 = vmatprep.subr.bf16.mxu1 %v2314_v35  ;;  %v2319_v40 = vld [vmem:[#allocation8 + $0x90] ss:$12 sps:$4 sm:$0xff]  }
 0x162   : > { %v452_v52 = vmul.f32 0.0078125, %v428_v50  ;;  %v482_v53 = vmul.f32 %v3026_v47, %v3026_v47  ;;  %v453_v54 = vmul.f32 0.0078125, %v430_v51  ;;  %v483_v56 = vmul.f32 %v3031_v49, %v3031_v49  ;;  %823 = vmatprep.subr.bf16.mxu0 %v2304_v18  ;;  %v2324_v45 = vld [vmem:[#allocation8 + $0xb0] ss:$12 sps:$4 sm:$0xff]   ;;  %849 = vmatprep.mubr.bf16.mxu0 %v2648_v46 }
 0x163   : > { %2118 = vmatpush3.bf16.msra.mxu1 %v2314_v35 }
 0x164   : > { %v3036_v55 = vsub.f32 %v2972_v8, %v452_v52  ;;  %502 = vadd.xlane.f32.xlu1 %v481_v48  ;;  %504 = vadd.xlane.f32.xlu0 %v482_v53  ;;  %v3041_v57 = vsub.f32 %v2975_v9, %v453_v54 }
 0x165   : > { %v432_v59 = vpop.xlane.xlu0 %431  ;;  %v434_v60 = vpop.xlane.xlu1 %433  ;;  %824 = vmatpush1.bf16.msra.mxu0 %v2307_v22  ;;  %2119 = vmatprep.subr.bf16.mxu1 %v2318_v38  ;;  %v3079_v22 = vld [vmem:[#allocation5] ss:$0 sm:$0xff] }
 0x166   : > { %v454_v61 = vmul.f32 0.0078125, %v432_v59  ;;  %v484_v62 = vmul.f32 %v3036_v55, %v3036_v55  ;;  %v455_v63 = vmul.f32 0.0078125, %v434_v60  ;;  %v485_v3 = vmul.f32 %v3041_v57, %v3041_v57  ;;  %825 = vmatprep.subr.bf16.mxu0 %v2308_v29 }
 0x167   : > { %2120 = vmatpush3.bf16.msra.mxu1 %v2318_v38 }
 0x168   : > { %v3046_v2 = vsub.f32 %v2981_v10, %v454_v61  ;;  %506 = vadd.xlane.f32.xlu1 %v483_v56  ;;  %508 = vadd.xlane.f32.xlu0 %v484_v62  ;;  %v3051_v4 = vsub.f32 %v2984_v11, %v455_v63 }
 0x169   : > { %v436_v5 = vpop.xlane.xlu0 %435  ;;  %v438_v6 = vpop.xlane.xlu1 %437  ;;  %826 = vmatpush1.bf16.msra.mxu0 %v2311_v32  ;;  %2121 = vmatprep.subr.bf16.mxu1 %v2322_v43 }
 0x16a   : > { %v456_v8 = vmul.f32 0.0078125, %v436_v5  ;;  %v486_v9 = vmul.f32 %v3046_v2, %v3046_v2  ;;  %v457_v16 = vmul.f32 0.0078125, %v438_v6  ;;  %v487_v11 = vmul.f32 %v3051_v4, %v3051_v4 }
 0x16b   : > { %2122 = vmatpush3.bf16.msra.mxu1 %v2322_v43 }
 0x16c   : > { %v3056_v10 = vsub.f32 %v2989_v12, %v456_v8  ;;  %510 = vadd.xlane.f32.xlu1 %v485_v3  ;;  %512 = vadd.xlane.f32.xlu0 %v486_v9  ;;  %v3061_v17 = vsub.f32 %v2992_v13, %v457_v16 }
 0x16d   : > { %v440_v20 = vpop.xlane.xlu0 %439  ;;  %v442_v21 = vpop.xlane.xlu1 %441  ;;  %2123 = vmatprep.subr.bf16.mxu1 %v2324_v45 }
 0x16e   : > { %v458_v23 = vmul.f32 0.0078125, %v440_v20  ;;  %v488_v26 = vmul.f32 %v3056_v10, %v3056_v10  ;;  %v459_v27 = vmul.f32 0.0078125, %v442_v21  ;;  %v489_v28 = vmul.f32 %v3061_v17, %v3061_v17 }
 0x16f   : > { %2124 = vmatpush3.bf16.msra.mxu1 %v2324_v45 }
 0x170   : > { %v3066_v12 = vsub.f32 %v2997_v14, %v458_v23  ;;  %514 = vadd.xlane.f32.xlu1 %v487_v11  ;;  %516 = vadd.xlane.f32.xlu0 %v488_v26  ;;  %v3069_v13 = vsub.f32 %v3000_v15, %v459_v27  ;;  %v2312_v15 = vld [vmem:[#allocation8 + $0x7c] ss:$12 sps:$4 sm:$0xff]  }
 0x171   : > { %827 = vmatprep.subr.bf16.mxu0 %v2312_v15 }
 0x172   : > { %v490_v34 = vmul.f32 %v3066_v12, %v3066_v12  ;;  %v491_v14 = vmul.f32 %v3069_v13, %v3069_v13  ;;  %828 = vmatpush1.bf16.msra.mxu0 %v2315_v36 }
 0x173   : > { %829 = vmatprep.subr.bf16.mxu0 %v2316_v37 }
 0x174   : > { %518 = vadd.xlane.f32.xlu1 %v489_v28  ;;  %520 = vadd.xlane.f32.xlu0 %v490_v34 }
 0x176   : > { %830 = vmatpush1.bf16.msra.mxu0 %v2319_v40 }
 0x177   : > { %831 = vmatprep.subr.bf16.mxu0 %v2320_v42 }
 0x178   : > { %522 = vadd.xlane.f32.xlu1 %v491_v14 }
 0x17a   : > { %832 = vmatpush1.bf16.msra.mxu0 %v2323_v44 }
 0x1e5   : > { %v493_v48 = vpop.xlane.xlu0 %492 }
 0x1e6   : > { %v524_v50 = vmul.f32 0.0078125, %v493_v48 }
 0x1e8   : > { %v540_v51 = vadd.f32 1e-05, %v524_v50 }
 0x1e9   : > { %v495_v52 = vpop.xlane.xlu1 %494  ;;  %v497_v53 = vpop.xlane.xlu0 %496 }
 0x1ea   : > { %2325 = vrsqrt.f32 %v540_v51  ;;  %v525_v54 = vmul.f32 0.0078125, %v495_v52  ;;  %v526_v56 = vmul.f32 0.0078125, %v497_v53 }
 0x1ec   : > { %v541_v58 = vadd.f32 1e-05, %v525_v54  ;;  %v542_v59 = vadd.f32 1e-05, %v526_v56 }
 0x1ed   : > { %v499_v60 = vpop.xlane.xlu1 %498  ;;  %v501_v61 = vpop.xlane.xlu0 %500 }
 0x1ee   : > { %2327 = vrsqrt.f32 %v541_v58  ;;  %v527_v62 = vmul.f32 0.0078125, %v499_v60  ;;  %v528_v63 = vmul.f32 0.0078125, %v501_v61 }
 0x1ef   : > { %2329 = vrsqrt.f32 %v542_v59 }
 0x1f0   : > { %v543_v0 = vadd.f32 1e-05, %v527_v62  ;;  %v544_v1 = vadd.f32 1e-05, %v528_v63 }
 0x1f1   : > { %v503_v3 = vpop.xlane.xlu1 %502  ;;  %v505_v5 = vpop.xlane.xlu0 %504 }
 0x1f2   : > { %2331 = vrsqrt.f32 %v543_v0  ;;  %v529_v6 = vmul.f32 0.0078125, %v503_v3  ;;  %v530_v7 = vmul.f32 0.0078125, %v505_v5 }
 0x1f3   : > { %2333 = vrsqrt.f32 %v544_v1 }
 0x1f4   : > { %v2326_v8 = vpop.eup %2325  ;;  %v545_v9 = vadd.f32 1e-05, %v529_v6  ;;  %v546_v16 = vadd.f32 1e-05, %v530_v7 }
 0x1f5   : > { %v507_v11 = vpop.xlane.xlu1 %506  ;;  %v509_v18 = vpop.xlane.xlu0 %508  ;;  %v572_v19 = vmul.f32 %v2326_v8, %v3004_v24  ;;  %v3083_v24 = vld [vmem:[#allocation7] ss:$0 sm:$0xff] }
 0x1f6   : > { %2335 = vrsqrt.f32 %v545_v9  ;;  %v531_v20 = vmul.f32 0.0078125, %v507_v11  ;;  %v532_v21 = vmul.f32 0.0078125, %v509_v18 }
 0x1f7   : > { %2337 = vrsqrt.f32 %v546_v16  ;;  %v594_v34 = vmul.f32 %v3079_v22, %v572_v19 }
 0x1f8   : > { %v2328_v23 = vpop.eup %2327  ;;  %v547_v26 = vadd.f32 1e-05, %v531_v20  ;;  %v548_v27 = vadd.f32 1e-05, %v532_v21 }
 0x1f9   : > { %v2330_v28 = vpop.eup %2329  ;;  %v511_v29 = vpop.xlane.xlu1 %510  ;;  %v573_v32 = vmul.f32 %v2328_v23, %v3010_v31  ;;  %v616_v45 = vadd.f32 %v3083_v24, %v594_v34 }
 0x1fa   : > { %v513_v30 = vpop.xlane.xlu0 %512  ;;  %2339 = vrsqrt.f32 %v547_v26  ;;  %v533_v14 = vmul.f32 0.0078125, %v511_v29  ;;  %v574_v35 = vmul.f32 %v2330_v28, %v3006_v25 }
 0x1fb   : > { %v534_v15 = vmul.f32 0.0078125, %v513_v30  ;;  %2341 = vrsqrt.f32 %v548_v27  ;;  %v595_v36 = vmul.f32 %v3079_v22, %v573_v32 }
 0x1fc   : > { %v2332_v37 = vpop.eup %2331  ;;  %v549_v38 = vadd.f32 1e-05, %v533_v14  ;;  %v596_v42 = vmul.f32 %v3079_v22, %v574_v35 }
 0x1fd   : > { %v550_v40 = vadd.f32 1e-05, %v534_v15  ;;  %v2334_v43 = vpop.eup %2333  ;;  %v515_v44 = vpop.xlane.xlu1 %514  ;;  %v617_v48 = vadd.f32 %v3083_v24, %v595_v36  ;;  %v575_v50 = vmul.f32 %v2332_v37, %v3014_v33 }
 0x1fe   : > { %v517_v31 = vpop.xlane.xlu0 %516  ;;  %2343 = vrsqrt.f32 %v549_v38  ;;  %v535_v51 = vmul.f32 0.0078125, %v515_v44  ;;  %v576_v54 = vmul.f32 %v2334_v43, %v3018_v39  ;;  %v618_v60 = vadd.f32 %v3083_v24, %v596_v42 }
 0x1ff   : > { %v536_v25 = vmul.f32 0.0078125, %v517_v31  ;;  %2345 = vrsqrt.f32 %v550_v40  ;;  %v632_v52 = vpack.c.bf16 %v617_v48, %v616_v45  ;;  %v597_v53 = vmul.f32 %v3079_v22, %v575_v50 }
 0x200   : > { %v2336_v56 = vpop.eup %2335  ;;  %v551_v58 = vadd.f32 1e-05, %v535_v51  ;;  %v598_v1 = vmul.f32 %v3079_v22, %v576_v54 }
 0x201   : > { %v552_v59 = vadd.f32 1e-05, %v536_v25  ;;  %v2338_v61 = vpop.eup %2337  ;;  %v519_v62 = vpop.xlane.xlu1 %518  ;;  %850 = vmatmul.mubr.bf16.vlgmr.msra.gmra.mrb[0].mxu0 %v632_v52  ;;  %2125 = vmatprep.mubr.bf16.mxu1 %v632_v52  ;;  %v619_v33 = vadd.f32 %v3083_v24, %v597_v53  ;;  %v577_v0 = vmul.f32 %v2336_v56, %v3022_v41 }
 0x202   : > { %v521_v63 = vpop.xlane.xlu0 %520  ;;  %2347 = vrsqrt.f32 %v551_v58  ;;  %v537_v3 = vmul.f32 0.0078125, %v519_v62  ;;  %859 = vmatprep.mubr.bf16.mxu0 %v2648_v46  ;;  %v578_v39 = vmul.f32 %v2338_v61, %v3026_v47  ;;  %v620_v19 = vadd.f32 %v3083_v24, %v598_v1 }
 0x203   : > { %v538_v5 = vmul.f32 0.0078125, %v521_v63  ;;  %2349 = vrsqrt.f32 %v552_v59  ;;  %v633_v6 = vpack.c.bf16 %v619_v33, %v618_v60  ;;  %v599_v7 = vmul.f32 %v3079_v22, %v577_v0  ;;  %v672_v63 = vld [vmem:[#allocation10] sm:$0x7] }
 0x204   : > { %v2340_v8 = vpop.eup %2339  ;;  %v553_v9 = vadd.f32 1e-05, %v537_v3  ;;  %v600_v11 = vmul.f32 %v3079_v22, %v578_v39 }
 0x205   : > { %v554_v16 = vadd.f32 1e-05, %v538_v5  ;;  %v2342_v18 = vpop.eup %2341  ;;  %v523_v41 = vpop.xlane.xlu1 %522  ;;  %2126 = vmatmul.mubr.bf16.vlgmr.msra.gmra.mrb[0].mxu1 %v633_v6  ;;  %v621_v20 = vadd.f32 %v3083_v24, %v599_v7  ;;  %v579_v21 = vmul.f32 %v2340_v8, %v3031_v49 }
 0x206   : > { %2351 = vrsqrt.f32 %v553_v9  ;;  %v539_v47 = vmul.f32 0.0078125, %v523_v41  ;;  %v580_v23 = vmul.f32 %v2342_v18, %v3036_v55  ;;  %v622_v30 = vadd.f32 %v3083_v24, %v600_v11 }
 0x207   : > { %2353 = vrsqrt.f32 %v554_v16  ;;  %v634_v26 = vpack.c.bf16 %v621_v20, %v620_v19  ;;  %v601_v27 = vmul.f32 %v3079_v22, %v579_v21 }
 0x208   : > { %v2344_v28 = vpop.eup %2343  ;;  %v555_v29 = vadd.f32 1e-05, %v539_v47  ;;  %v602_v49 = vmul.f32 %v3079_v22, %v580_v23 }
 0x209   : > { %v2346_v32 = vpop.eup %2345  ;;  %860 = vmatmul.mubr.bf16.gmra.mrb[4].mxu0 %v633_v6  ;;  %2129 = vmatprep.mubr.bf16.mxu1 %v634_v26  ;;  %v623_v34 = vadd.f32 %v3083_v24, %v601_v27  ;;  %v581_v14 = vmul.f32 %v2344_v28, %v3041_v57 }
 0x20a   : > { %2355 = vrsqrt.f32 %v555_v29  ;;  %869 = vmatprep.mubr.bf16.mxu0 %v2648_v46  ;;  %v582_v55 = vmul.f32 %v2346_v32, %v3046_v2  ;;  %v624_v40 = vadd.f32 %v3083_v24, %v602_v49 }
 0x20b   : > { %v635_v15 = vpack.c.bf16 %v623_v34, %v622_v30  ;;  %v603_v35 = vmul.f32 %v3079_v22, %v581_v14 }
 0x20c   : > { %v2348_v36 = vpop.eup %2347  ;;  %v604_v37 = vmul.f32 %v3079_v22, %v582_v55 }
 0x20d   : > { %v2350_v38 = vpop.eup %2349  ;;  %2130 = vmatmul.mubr.bf16.gmra.mrb[4].mxu1 %v635_v15  ;;  %v625_v42 = vadd.f32 %v3083_v24, %v603_v35  ;;  %v583_v57 = vmul.f32 %v2348_v36, %v3051_v4 }
 0x20e   : > { %v584_v43 = vmul.f32 %v2350_v38, %v3056_v10  ;;  %v626_v45 = vadd.f32 %v3083_v24, %v604_v37 }
 0x20f   : > { %v636_v44 = vpack.c.bf16 %v625_v42, %v624_v40  ;;  %v605_v31 = vmul.f32 %v3079_v22, %v583_v57 }
 0x210   : > { %v2352_v2 = vpop.eup %2351  ;;  %v606_v25 = vmul.f32 %v3079_v22, %v584_v43 }
 0x211   : > { %v2354_v48 = vpop.eup %2353  ;;  %870 = vmatmul.mubr.bf16.gmra.mrb[8].mxu0 %v634_v26  ;;  %2133 = vmatprep.mubr.bf16.mxu1 %v636_v44  ;;  %v627_v50 = vadd.f32 %v3083_v24, %v605_v31  ;;  %v585_v51 = vmul.f32 %v2352_v2, %v3061_v17 }
 0x212   : > { %879 = vmatprep.mubr.bf16.mxu0 %v2648_v46  ;;  %v586_v4 = vmul.f32 %v2354_v48, %v3066_v12  ;;  %v628_v54 = vadd.f32 %v3083_v24, %v606_v25 }
 0x213   : > { %v637_v10 = vpack.c.bf16 %v627_v50, %v626_v45  ;;  %v607_v52 = vmul.f32 %v3079_v22, %v585_v51 }
 0x214   : > { %v2356_v53 = vpop.eup %2355  ;;  %v608_v59 = vmul.f32 %v3079_v22, %v586_v4 }
 0x215   : > { %2134 = vmatmul.mubr.bf16.gmra.mrb[8].mxu1 %v637_v10  ;;  %v629_v56 = vadd.f32 %v3083_v24, %v607_v52  ;;  %v587_v58 = vmul.f32 %v2356_v53, %v3069_v13  ;;  %v674_v13 = vlaneseq }
 0x216   : > { %v630_v12 = vadd.f32 %v3083_v24, %v608_v59 }
 0x217   : > { %v638_v17 = vpack.c.bf16 %v629_v56, %v628_v54  ;;  %v609_v60 = vmul.f32 %v3079_v22, %v587_v58  ;;  %v675_v22 = vshrl.u32 %v674_v13, 7 }
 0x219   : > { %880 = vmatmul.mubr.bf16.gmra.mrb[12].mxu0 %v635_v15  ;;  %2137 = vmatprep.mubr.bf16.mxu1 %v638_v17  ;;  %v631_v61 = vadd.f32 %v3083_v24, %v609_v60  ;;  %v680_v24 = vsub.s32 1, %v675_v22  ;;  %v676_v0 = vsub.s32 0, %v675_v22  ;;  %v684_v3 = vsub.s32 2, %v675_v22 }
 0x21a   : > { %889 = vmatprep.mubr.bf16.mxu0 %v2648_v46 }
 0x21b   : > { %v639_v62 = vpack.c.bf16 %v631_v61, %v630_v12  ;;  %v3137_v33 = vrot.slane %v672_v63, %v680_v24  ;;  %v3139_v1 = vrot.slane %v672_v63, %v676_v0  ;;  %v3142_v7 = vrot.slane %v672_v63, %v684_v3 }
 0x21d   : > { %2138 = vmatmul.mubr.bf16.gmra.mrb[12].mxu1 %v639_v62 }
 0x221   : > { %890 = vmatmul.mubr.bf16.gmra.mrb[16].mxu0 %v636_v44 }
 0x222   : > { %899 = vmatprep.mubr.bf16.mxu0 %v2648_v46 }
 0x229   : > { %900 = vmatmul.mubr.bf16.gmra.mrb[20].mxu0 %v637_v10 }
 0x22a   : > { %909 = vmatprep.mubr.bf16.mxu0 %v2648_v46 }
 0x231   : > { %910 = vmatmul.mubr.bf16.gmra.mrb[24].mxu0 %v638_v17 }
 0x232   : > { %919 = vmatprep.mubr.bf16.mxu0 %v2648_v46 }
 0x239   : > { %920 = vmatmul.mubr.bf16.gmra.mrb[28].mxu0 %v639_v62 }
 0x2d4   : > { %v851_v5 = vpop.f32.mrb[0].mxu0 }
 0x2d5   : > { %v852_v39 = vadd.f32 %v851_v5, %v3139_v1  ;;  %v853_v6 = vpop.f32.mrb[1].mxu0 }
 0x2d6   : > { %v3145_v46 = vadd.f32 %v853_v6, %v3137_v33  ;;  %v855_v8 = vpop.f32.mrb[2].mxu0 }
 0x2d7   : > { %v856_v9 = vadd.f32 %v855_v8, %v3139_v1  ;;  %v857_v16 = vpop.f32.mrb[3].mxu0  ;;  %v1027_v41 = vmul.f32 0.17677669, %v852_v39 }
 0x2d8   : > { %v3151_v11 = vadd.f32 %v857_v16, %v3137_v33  ;;  %v2127_v18 = vpop.f32.mrb[0].mxu1 }
 0x2d9   : > { %v1028_v19 = vmul.f32 0.17677669, %v856_v9  ;;  %v973_v20 = vadd.f32 %v2127_v18, %v3142_v7  ;;  %v964_v21 = vpop.f32.mrb[1].mxu1 }
 0x2da   : > { %v965_v47 = vadd.f32 %v964_v21, %v3142_v7  ;;  %v2128_v23 = vpop.f32.mrb[2].mxu1 }
 0x2db   : > { %v2002_v26 = vpack.c.bf16 %v1028_v19, %v1027_v41  ;;  %v1985_v27 = vpack.c.bf16 %v973_v20, %v973_v20  ;;  %v976_v28 = vadd.f32 %v2128_v23, %v3142_v7  ;;  %v967_v29 = vpop.f32.mrb[3].mxu1 }
 0x2dc   : > { %v3156_v30 = vpack.c.bf16 %v965_v47, %v965_v47  ;;  %v968_v32 = vadd.f32 %v967_v29, %v3142_v7  ;;  %v861_v34 = vpop.f32.mrb[4].mxu0 }
 0x2dd   : > { %2003 = vst [vmem:[%s3161_s13] sm:$0xff] %v2002_v26   ;;  %1302 = vst.msk [vmem:[%s3164_s24 + $0x8] sm:$0xf] %vm1299_vm0, %v1985_v27  ;;  %v3168_v14 = vpack.c.bf16 %v976_v28, %v976_v28  ;;  %v862_v49 = vadd.f32 %v861_v34, %v3139_v1  ;;  %1320 = vrot.lane.b32.xlu1 %v1985_v27, %s2649_s12  ;;  %v863_v55 = vpop.f32.mrb[5].mxu0 }
 0x2de   : > { %1300 = vst.msk [vmem:[%s3164_s24] sm:$0xf] %vm1299_vm0, %v3156_v30  ;;  %v3175_v15 = vpack.c.bf16 %v968_v32, %v968_v32  ;;  %v3178_v35 = vadd.f32 %v863_v55, %v3137_v33  ;;  %v865_v36 = vpop.f32.mrb[6].mxu0 }
 0x2df   : > { %1303 = vst.msk [vmem:[%s3164_s24 + $0xc] sm:$0xf] %vm1299_vm0, %v3168_v14  ;;  %v866_v37 = vadd.f32 %v865_v36, %v3139_v1  ;;  %1452 = vrot.lane.b32.xlu0 %v3168_v14, %s2650_s18  ;;  %v867_v38 = vpop.f32.mrb[7].mxu0  ;;  %v1029_v57 = vmul.f32 0.17677669, %v862_v49 }
 0x2e0   : > { %1301 = vst.msk [vmem:[%s3164_s24 + $0x4] sm:$0xf] %vm1299_vm0, %v3175_v15  ;;  %v3190_v40 = vadd.f32 %v867_v38, %v3137_v33  ;;  %v2131_v42 = vpop.f32.mrb[4].mxu1 }
 0x2e1   : > { %v1030_v43 = vmul.f32 0.17677669, %v866_v37  ;;  %v989_v44 = vadd.f32 %v2131_v42, %v3142_v7  ;;  %1385 = vrot.lane.b32.xlu1 %v1985_v27, %s2651_s23  ;;  %v980_v31 = vpop.f32.mrb[5].mxu1 }
 0x2e2   : > { %v981_v2 = vadd.f32 %v980_v31, %v3142_v7  ;;  %v2132_v45 = vpop.f32.mrb[6].mxu1 }
 0x2e3   : > { %v2007_v48 = vpack.c.bf16 %v1030_v43, %v1029_v57  ;;  %v3195_v50 = vpack.c.bf16 %v989_v44, %v989_v44  ;;  %v992_v51 = vadd.f32 %v2132_v45, %v3142_v7  ;;  %v983_v25 = vpop.f32.mrb[7].mxu1 }
 0x2e4   : > { %v3198_v4 = vpack.c.bf16 %v981_v2, %v981_v2  ;;  %v984_v10 = vadd.f32 %v983_v25, %v3142_v7  ;;  %v871_v52 = vpop.f32.mrb[8].mxu0 }
 0x2e5   : > { %2079 = vst [vmem:[%s3161_s13 + $0x8] sm:$0xff] %v2007_v48   ;;  %1306 = vst.msk [vmem:[%s3164_s24 + $0x18] sm:$0xf] %vm1299_vm0, %v3195_v50  ;;  %v3205_v53 = vpack.c.bf16 %v992_v51, %v992_v51  ;;  %v872_v54 = vadd.f32 %v871_v52, %v3139_v1  ;;  %1450 = vrot.lane.b32.xlu1 %v1985_v27, %s2650_s18  ;;  %v873_v56 = vpop.f32.mrb[9].mxu0 }
 0x2e6   : > { %1304 = vst.msk [vmem:[%s3164_s24 + $0x10] sm:$0xf] %vm1299_vm0, %v3198_v4  ;;  %v3212_v58 = vpack.c.bf16 %v984_v10, %v984_v10  ;;  %v3215_v59 = vadd.f32 %v873_v56, %v3137_v33  ;;  %v875_v17 = vpop.f32.mrb[10].mxu0 }
 0x2e7   : > { %1307 = vst.msk [vmem:[%s3164_s24 + $0x1c] sm:$0xf] %vm1299_vm0, %v3205_v53  ;;  %v876_v60 = vadd.f32 %v875_v17, %v3139_v1  ;;  %v877_v12 = vpop.f32.mrb[11].mxu0  ;;  %1395 = vrot.lane.b32.xlu0 %v3205_v53, %s2651_s23  ;;  %v1031_v13 = vmul.f32 0.17677669, %v872_v54 }
 0x2e8   : > { %1305 = vst.msk [vmem:[%s3164_s24 + $0x14] sm:$0xf] %vm1299_vm0, %v3212_v58  ;;  %v3227_v61 = vadd.f32 %v877_v12, %v3137_v33  ;;  %v2135_v62 = vpop.f32.mrb[8].mxu1 }
 0x2e9   : > { %v1032_v22 = vmul.f32 0.17677669, %v876_v60  ;;  %v1005_v63 = vadd.f32 %v2135_v62, %v3142_v7  ;;  %1316 = vrot.lane.b32.xlu1 %v3156_v30, %s2649_s12  ;;  %v996_v24 = vpop.f32.mrb[9].mxu1 }
 0x2ea   : > { %v997_v0 = vadd.f32 %v996_v24, %v3142_v7  ;;  %v2136_v3 = vpop.f32.mrb[10].mxu1 }
 0x2eb   : > { %v2012_v5 = vpack.c.bf16 %v1032_v22, %v1031_v13  ;;  %v3233_v39 = vpack.c.bf16 %v1005_v63, %v1005_v63  ;;  %v1008_v6 = vadd.f32 %v2136_v3, %v3142_v7  ;;  %1460 = vrot.lane.b32.xlu0 %v3205_v53, %s2650_s18  ;;  %v999_v8 = vpop.f32.mrb[11].mxu1 }
 0x2ec   : > { %v3238_v9 = vpack.c.bf16 %v997_v0, %v997_v0  ;;  %v1000_v16 = vadd.f32 %v999_v8, %v3142_v7  ;;  %v881_v18 = vpop.f32.mrb[12].mxu0 }
 0x2ed   : > { %2080 = vst [vmem:[%s3161_s13 + $0x10] sm:$0xff] %v2012_v5   ;;  %1310 = vst.msk [vmem:[%s3164_s24 + $0x28] sm:$0xf] %vm1299_vm0, %v3233_v39  ;;  %v3245_v41 = vpack.c.bf16 %v1008_v6, %v1008_v6  ;;  %v882_v19 = vadd.f32 %v881_v18, %v3139_v1  ;;  %1381 = vrot.lane.b32.xlu1 %v3156_v30, %s2651_s23  ;;  %v883_v20 = vpop.f32.mrb[13].mxu0 }
 0x2ee   : > { %1308 = vst.msk [vmem:[%s3164_s24 + $0x20] sm:$0xf] %vm1299_vm0, %v3238_v9  ;;  %v3253_v21 = vpack.c.bf16 %v1000_v16, %v1000_v16  ;;  %v3256_v47 = vadd.f32 %v883_v20, %v3137_v33  ;;  %v885_v23 = vpop.f32.mrb[14].mxu0 }
 0x2ef   : > { %1311 = vst.msk [vmem:[%s3164_s24 + $0x2c] sm:$0xf] %vm1299_vm0, %v3245_v41  ;;  %v886_v26 = vadd.f32 %v885_v23, %v3139_v1  ;;  %1456 = vrot.lane.b32.xlu0 %v3212_v58, %s2650_s18  ;;  %v887_v27 = vpop.f32.mrb[15].mxu0  ;;  %v1033_v32 = vmul.f32 0.17677669, %v882_v19 }
 0x2f0   : > { %1309 = vst.msk [vmem:[%s3164_s24 + $0x24] sm:$0xf] %vm1299_vm0, %v3253_v21  ;;  %v3268_v28 = vadd.f32 %v887_v27, %v3137_v33  ;;  %v2139_v29 = vpop.f32.mrb[12].mxu1 }
 0x2f1   : > { %v1034_v34 = vmul.f32 0.17677669, %v886_v26  ;;  %v1021_v49 = vadd.f32 %v2139_v29, %v3142_v7  ;;  %1446 = vrot.lane.b32.xlu1 %v3156_v30, %s2650_s18  ;;  %v1012_v55 = vpop.f32.mrb[13].mxu1 }
 0x2f2   : > { %v1013_v36 = vadd.f32 %v1012_v55, %v3142_v7  ;;  %v2140_v37 = vpop.f32.mrb[14].mxu1 }
 0x2f3   : > { %v2017_v38 = vpack.c.bf16 %v1034_v34, %v1033_v32  ;;  %v3274_v42 = vpack.c.bf16 %v1021_v49, %v1021_v49  ;;  %v1024_v57 = vadd.f32 %v2140_v37, %v3142_v7  ;;  %1468 = vrot.lane.b32.xlu0 %v3245_v41, %s2650_s18  ;;  %v1015_v43 = vpop.f32.mrb[15].mxu1 }
 0x2f4   : > { %v3279_v44 = vpack.c.bf16 %v1013_v36, %v1013_v36  ;;  %v1016_v31 = vadd.f32 %v1015_v43, %v3142_v7  ;;  %v891_v30 = vpop.f32.mrb[16].mxu0 }
 0x2f5   : > { %2081 = vst [vmem:[%s3161_s13 + $0x18] sm:$0xff] %v2017_v38   ;;  %1314 = vst.msk [vmem:[%s3164_s24 + $0x38] sm:$0xf] %vm1299_vm0, %v3274_v42  ;;  %v3286_v2 = vpack.c.bf16 %v1024_v57, %v1024_v57  ;;  %v892_v45 = vadd.f32 %v891_v30, %v3139_v1  ;;  %1322 = vrot.lane.b32.xlu1 %v3168_v14, %s2649_s12  ;;  %v893_v48 = vpop.f32.mrb[17].mxu0 }
 0x2f6   : > { %1312 = vst.msk [vmem:[%s3164_s24 + $0x30] sm:$0xf] %vm1299_vm0, %v3279_v44  ;;  %v3294_v51 = vpack.c.bf16 %v1016_v31, %v1016_v31  ;;  %v3297_v7 = vadd.f32 %v893_v48, %v3137_v33  ;;  %v895_v25 = vpop.f32.mrb[18].mxu0 }
 0x2f7   : > { %1315 = vst.msk [vmem:[%s3164_s24 + $0x3c] sm:$0xf] %vm1299_vm0, %v3286_v2  ;;  %v896_v10 = vadd.f32 %v895_v25, %v3139_v1  ;;  %v897_v52 = vpop.f32.mrb[19].mxu0  ;;  %1464 = vrot.lane.b32.xlu0 %v3253_v21, %s2650_s18  ;;  %v1035_v56 = vmul.f32 0.17677669, %v892_v45 }
 0x2f8   : > { %1313 = vst.msk [vmem:[%s3164_s24 + $0x34] sm:$0xf] %vm1299_vm0, %v3294_v51  ;;  %v3309_v54 = vadd.f32 %v897_v52, %v3137_v33 }
 0x2f9   : > { %v1036_v17 = vmul.f32 0.17677669, %v896_v10  ;;  %1387 = vrot.lane.b32.xlu1 %v3168_v14, %s2651_s23 }
 0x2fb   : > { %v2022_v60 = vpack.c.bf16 %v1036_v17, %v1035_v56  ;;  %1472 = vrot.lane.b32.xlu0 %v3294_v51, %s2650_s18 }
 0x2fc   : > { %v901_v12 = vpop.f32.mrb[20].mxu0 }
 0x2fd   : > { %2082 = vst [vmem:[%s3161_s13 + $0x20] sm:$0xff] %v2022_v60   ;;  %v902_v62 = vadd.f32 %v901_v12, %v3139_v1  ;;  %1318 = vrot.lane.b32.xlu1 %v3175_v15, %s2649_s12  ;;  %v903_v13 = vpop.f32.mrb[21].mxu0 }
 0x2fe   : > { %v904_v22 = vadd.f32 %v903_v13, %v3137_v33  ;;  %v905_v63 = vpop.f32.mrb[22].mxu0 }
 0x2ff   : > { %v906_v24 = vadd.f32 %v905_v63, %v3139_v1  ;;  %v907_v0 = vpop.f32.mrb[23].mxu0  ;;  %v1037_v3 = vmul.f32 0.17677669, %v902_v62 }
 0x300   : > { %v908_v14 = vadd.f32 %v907_v0, %v3137_v33 }
 0x301   : > { %v1038_v5 = vmul.f32 0.17677669, %v906_v24  ;;  %1383 = vrot.lane.b32.xlu1 %v3175_v15, %s2651_s23 }
 0x303   : > { %v2027_v6 = vpack.c.bf16 %v1038_v5, %v1037_v3 }
 0x304   : > { %v911_v8 = vpop.f32.mrb[24].mxu0 }
 0x305   : > { %2083 = vst [vmem:[%s3161_s13 + $0x28] sm:$0xff] %v2027_v6   ;;  %v912_v16 = vadd.f32 %v911_v8, %v3139_v1  ;;  %1448 = vrot.lane.b32.xlu1 %v3175_v15, %s2650_s18  ;;  %v913_v18 = vpop.f32.mrb[25].mxu0 }
 0x306   : > { %v914_v19 = vadd.f32 %v913_v18, %v3137_v33  ;;  %v915_v20 = vpop.f32.mrb[26].mxu0 }
 0x307   : > { %v916_v23 = vadd.f32 %v915_v20, %v3139_v1  ;;  %v917_v26 = vpop.f32.mrb[27].mxu0  ;;  %v1039_v29 = vmul.f32 0.17677669, %v912_v16 }
 0x308   : > { %v918_v27 = vadd.f32 %v917_v26, %v3137_v33 }
 0x309   : > { %v1040_v32 = vmul.f32 0.17677669, %v916_v23  ;;  %1328 = vrot.lane.b32.xlu1 %v3195_v50, %s2649_s12 }
 0x30b   : > { %v2032_v34 = vpack.c.bf16 %v1040_v32, %v1039_v29 }
 0x30c   : > { %v921_v49 = vpop.f32.mrb[28].mxu0 }
 0x30d   : > { %2084 = vst [vmem:[%s3161_s13 + $0x30] sm:$0xff] %v2032_v34   ;;  %v922_v15 = vadd.f32 %v921_v49, %v3139_v1  ;;  %1393 = vrot.lane.b32.xlu1 %v3195_v50, %s2651_s23  ;;  %v923_v55 = vpop.f32.mrb[29].mxu0 }
 0x30e   : > { %v924_v36 = vadd.f32 %v923_v55, %v3137_v33  ;;  %v925_v37 = vpop.f32.mrb[30].mxu0 }
 0x30f   : > { %v926_v38 = vadd.f32 %v925_v37, %v3139_v1  ;;  %v927_v57 = vpop.f32.mrb[31].mxu0  ;;  %v1041_v31 = vmul.f32 0.17677669, %v922_v15 }
 0x310   : > { %v928_v43 = vadd.f32 %v927_v57, %v3137_v33 }
 0x311   : > { %v1042_v30 = vmul.f32 0.17677669, %v926_v38  ;;  %1458 = vrot.lane.b32.xlu1 %v3195_v50, %s2650_s18 }
 0x313   : > { %v2037_v45 = vpack.c.bf16 %v1042_v30, %v1041_v31 }
 0x315   : > { %2085 = vst [vmem:[%s3161_s13 + $0x38] sm:$0xff] %v2037_v45   ;;  %1324 = vrot.lane.b32.xlu1 %v3198_v4, %s2649_s12  ;;  %s2503_s13 = sshll.u32 %s2652_s11, 4  ;;  %s2504_s13 = int_to_ptr.vmem [resolvable:$false] %s2503_s13 }
 0x316   : > { %s2505_s19 = scalar_lea.vmem %s2504_s13, 2048  ;;  %p2506_p7 = scmp.lt.s32.totalorder %s3432_s10, %s2504_s13 }
 0x317   : > { %p2507_p12 = scmp.lt.s32.totalorder %s2505_s19, %s2499_s16 }
 0x319   : > { %1389 = vrot.lane.b32.xlu1 %v3198_v4, %s2651_s23  ;;  %1123 = vxpose.xlu0.b32.start [1/16] %v3145_v46, 128  ;;  %p2508_p11 = por %p2507_p12, %p2506_p7 }
 0x31b   : > { %p2509_p13 = pnand %p2508_p11, %p2502_p3 }
 0x31d   : > { %1454 = vrot.lane.b32.xlu1 %v3198_v4, %s2650_s18  ;;  %1124 = vxpose.xlu0.b32.cont [2/16] %v3151_v11, 128 }
 0x321   : > { %1330 = vrot.lane.b32.xlu1 %v3205_v53, %s2649_s12  ;;  %1125 = vxpose.xlu0.b32.cont [3/16] %v3178_v35, 128 }
 0x325   : > { %1326 = vrot.lane.b32.xlu1 %v3212_v58, %s2649_s12  ;;  %1126 = vxpose.xlu0.b32.cont [4/16] %v3190_v40, 128 }
 0x329   : > { %1391 = vrot.lane.b32.xlu1 %v3212_v58, %s2651_s23  ;;  %1127 = vxpose.xlu0.b32.cont [5/16] %v3215_v59, 128 }
 0x32d   : > { %1336 = vrot.lane.b32.xlu1 %v3233_v39, %s2649_s12  ;;  %1128 = vxpose.xlu0.b32.cont [6/16] %v3227_v61, 128 }
 0x331   : > { %1401 = vrot.lane.b32.xlu1 %v3233_v39, %s2651_s23  ;;  %1129 = vxpose.xlu0.b32.cont [7/16] %v3256_v47, 128 }
 0x335   : > { %1466 = vrot.lane.b32.xlu1 %v3233_v39, %s2650_s18  ;;  %1130 = vxpose.xlu0.b32.cont [8/16] %v3268_v28, 128 }
 0x339   : > { %1332 = vrot.lane.b32.xlu1 %v3238_v9, %s2649_s12  ;;  %1131 = vxpose.xlu0.b32.cont [9/16] %v3297_v7, 128 }
 0x33d   : > { %1397 = vrot.lane.b32.xlu1 %v3238_v9, %s2651_s23  ;;  %1132 = vxpose.xlu0.b32.cont [10/16] %v3309_v54, 128 }
 0x341   : > { %1462 = vrot.lane.b32.xlu1 %v3238_v9, %s2650_s18  ;;  %1133 = vxpose.xlu0.b32.cont [11/16] %v904_v22, 128 }
 0x345   : > { %1338 = vrot.lane.b32.xlu1 %v3245_v41, %s2649_s12  ;;  %1134 = vxpose.xlu0.b32.cont [12/16] %v908_v14, 128 }
 0x349   : > { %1403 = vrot.lane.b32.xlu1 %v3245_v41, %s2651_s23  ;;  %1135 = vxpose.xlu0.b32.cont [13/16] %v914_v19, 128 }
 0x34d   : > { %1334 = vrot.lane.b32.xlu1 %v3253_v21, %s2649_s12  ;;  %1136 = vxpose.xlu0.b32.cont [14/16] %v918_v27, 128 }
 0x34f   : > { %v1321_v33 = vpop.permute.xlu1 %1320 }
 0x350   : > { %1892 = vst.msk [vmem:[%s3164_s24 + $0x48] sm:$0xf] %vm1299_vm0, %v1321_v33 }
 0x351   : > { %1399 = vrot.lane.b32.xlu1 %v3253_v21, %s2651_s23  ;;  %1137 = vxpose.xlu0.b32.cont [15/16] %v924_v36, 128  ;;  %v1453_v1 = vpop.permute.xlu0 %1452 }
 0x352   : > { %1925 = vst.msk [vmem:[%s3164_s24 + $0xcc] sm:$0xf] %vm1299_vm0, %v1453_v1 }
 0x353   : > { %v1386_v46 = vpop.permute.xlu1 %1385 }
 0x354   : > { %1908 = vst.msk [vmem:[%s3164_s24 + $0x88] sm:$0xf] %vm1299_vm0, %v1386_v46 }
 0x355   : > { %1344 = vrot.lane.b32.xlu1 %v3274_v42, %s2649_s12  ;;  %1138 = vxpose.xlu0.b32.end [16/16] %v928_v43, 128 }
 0x357   : > { %v1451_v11 = vpop.permute.xlu1 %1450 }
 0x358   : > { %1924 = vst.msk [vmem:[%s3164_s24 + $0xc8] sm:$0xf] %vm1299_vm0, %v1451_v11 }
 0x359   : > { %1409 = vrot.lane.b32.xlu1 %v3274_v42, %s2651_s23  ;;  %v1396_v35 = vpop.permute.xlu0 %1395 }
 0x35a   : > { %1913 = vst.msk [vmem:[%s3164_s24 + $0x9c] sm:$0xf] %vm1299_vm0, %v1396_v35 }
 0x35b   : > { %v1317_v40 = vpop.permute.xlu1 %1316 }
 0x35c   : > { %1890 = vst.msk [vmem:[%s3164_s24 + $0x40] sm:$0xf] %vm1299_vm0, %v1317_v40 }
 0x35d   : > { %1340 = vrot.lane.b32.xlu1 %v3279_v44, %s2649_s12  ;;  %v1461_v50 = vpop.permute.xlu0 %1460 }
 0x35e   : > { %1929 = vst.msk [vmem:[%s3164_s24 + $0xdc] sm:$0xf] %vm1299_vm0, %v1461_v50 }
 0x35f   : > { %v1382_v4 = vpop.permute.xlu1 %1381 }
 0x360   : > { %1906 = vst.msk [vmem:[%s3164_s24 + $0x80] sm:$0xf] %vm1299_vm0, %v1382_v4 }
 0x361   : > { %1405 = vrot.lane.b32.xlu1 %v3279_v44, %s2651_s23  ;;  %v1457_v53 = vpop.permute.xlu0 %1456 }
 0x362   : > { %1927 = vst.msk [vmem:[%s3164_s24 + $0xd4] sm:$0xf] %vm1299_vm0, %v1457_v53 }
 0x363   : > { %v1447_v58 = vpop.permute.xlu1 %1446 }
 0x364   : > { %1922 = vst.msk [vmem:[%s3164_s24 + $0xc0] sm:$0xf] %vm1299_vm0, %v1447_v58 }
 0x365   : > { %1470 = vrot.lane.b32.xlu1 %v3279_v44, %s2650_s18  ;;  %v1469_v59 = vpop.permute.xlu0 %1468 }
 0x366   : > { %1933 = vst.msk [vmem:[%s3164_s24 + $0xec] sm:$0xf] %vm1299_vm0, %v1469_v59 }
 0x367   : > { %v1323_v61 = vpop.permute.xlu1 %1322 }
 0x368   : > { %1893 = vst.msk [vmem:[%s3164_s24 + $0x4c] sm:$0xf] %vm1299_vm0, %v1323_v61 }
 0x369   : > { %1346 = vrot.lane.b32.xlu1 %v3286_v2, %s2649_s12  ;;  %v1465_v39 = vpop.permute.xlu0 %1464 }
 0x36a   : > { %1931 = vst.msk [vmem:[%s3164_s24 + $0xe4] sm:$0xf] %vm1299_vm0, %v1465_v39 }
 0x36b   : > { %v1388_v9 = vpop.permute.xlu1 %1387 }
 0x36c   : > { %1909 = vst.msk [vmem:[%s3164_s24 + $0x8c] sm:$0xf] %vm1299_vm0, %v1388_v9 }
 0x36d   : > { %1411 = vrot.lane.b32.xlu1 %v3286_v2, %s2651_s23  ;;  %v1473_v41 = vpop.permute.xlu0 %1472 }
 0x36e   : > { %1935 = vst.msk [vmem:[%s3164_s24 + $0xf4] sm:$0xf] %vm1299_vm0, %v1473_v41 }
 0x36f   : > { %v1319_v21 = vpop.permute.xlu1 %1318 }
 0x370   : > { %1891 = vst.msk [vmem:[%s3164_s24 + $0x44] sm:$0xf] %vm1299_vm0, %v1319_v21 }
 0x371   : > { %1342 = vrot.lane.b32.xlu1 %v3294_v51, %s2649_s12 }
 0x373   : > { %v1384_v47 = vpop.permute.xlu1 %1383 }
 0x374   : > { %2512 = shalt.err (!%p2509_p13)
}
 0x375   : > { %s2513_s12 = scalar_lea.hbm %s3445_s3, 1024  ;;  %s2517_s17 = scalar_lea.hbm %s3651_s5, 4096 }
 0x376   : > { %p2514_p5 = scmp.ne.s32.totalorder %s3445_s3, %s2513_s12  ;;  %p2518_p2 = scmp.lt.u32.totalorder %s3445_s3, %s3651_s5 }
 0x377   : > { %p2519_p10 = scmp.lt.u32.totalorder %s2517_s17, %s2513_s12  ;;  %p2521_p6 = scmp.lt.u32.totalorder %s2513_s12, %s3445_s3 }
 0x378   : > { %p2515_p9 = pnand %p2514_p5, %p2882_p4 }
 0x379   : > { %p2520_p1 = por %p2519_p10, %p2518_p2 }
 0x37a   : > { %p2516_p0 = pneg %p2515_p9 }
 0x37b   : > { %p2522_p8 = por %p2521_p6, %p2520_p1 }
 0x37d   : > { %p2523_p3 = pnand %p2522_p8, %p2516_p0 }
 0x37f   : > { %2526 = shalt.err (!%p2523_p3)
}
 0x380   : > { %s2653_s19 = smov 4   ;;  %1907 = vst.msk [vmem:[%s3164_s24 + $0x84] sm:$0xf] %vm1299_vm0, %v1384_v47  ;;  %1407 = vrot.lane.b32.xlu1 %v3294_v51, %s2651_s23  ;;  %v1449_v28 = vpop.permute.xlu1 %1448  ;;  %1476 = vrot.lane.b32.xlu0 %v3286_v2, %s2650_s18  ;;  %s1551_s21 = sadd.s32 %s2621_s27, %s1942_s15 }
 0x381   : > { %2159 = dma.vmem_to_hbm [thread:$0]  (%p2882_p4), %s3432_s10, 1024, %s3445_s3, %s1512_s4, %s2651_s23, %s2651_s23, %s2653_s19  }
 0x382   : > { %1923 = vst.msk [vmem:[%s3164_s24 + $0xc4] sm:$0xf] %vm1299_vm0, %v1449_v28  ;;  %s1945_s10 = sshll.u32 %s1551_s21, 6  ;;  %s1516_s3 = sand.u32 1, %s2744_s9  }
 0x383   : > { %s3691_s15 = sld [smem:[#allocation29_spill]]  ;;  %s3556_s12 = scalar_lea.sflag [#allocation13], %s1516_s3 }
 0x384   : > { %1474 = vrot.lane.b32.xlu1 %v3274_v42, %s2650_s18  ;;  %v1329_v44 = vpop.permute.xlu1 %1328  ;;  %s3506_s18 = scalar_lea.vmem [#allocation12], %s1813_s6  ;;  %s2654_s22 = smov [#allocation12]  }
 0x385   : > { %1896 = vst.msk [vmem:[%s3164_s24 + $0x58] sm:$0xf] %vm1299_vm0, %v1329_v44  ;;  %s1554_s6 = sshll.u32 %s3506_s18, 4  ;;  %s2531_s20 = sshll.u32 %s2654_s22, 4  ;;  %s3546_s6 = int_to_ptr.vmem [resolvable:$true] %s1554_s6  ;;  %s2532_s20 = int_to_ptr.vmem [resolvable:$false] %s2531_s20 }
 0x386   : > { %s2527_s9 = scalar_lea.vmem %s3546_s6, 1024  ;;  %s2533_s17 = scalar_lea.vmem %s2532_s20, 2048 }
 0x387   : > { %p2528_p7 = scmp.ne.s32.totalorder %s3546_s6, %s2527_s9  ;;  %p2534_p13 = scmp.lt.s32.totalorder %s3546_s6, %s2532_s20 }
 0x388   : > { %v1394_v48 = vpop.permute.xlu1 %1393  ;;  %p2535_p5 = scmp.lt.s32.totalorder %s2533_s17, %s2527_s9 }
 0x389   : > { %1912 = vst.msk [vmem:[%s3164_s24 + $0x98] sm:$0xf] %vm1299_vm0, %v1394_v48  ;;  %s3551_s13 = scalar_lea.hbm %s3691_s15, %s1945_s10  ;;  %p2529_p12 = pnand %p2528_p7, %p2882_p4 }
 0x38a   : > { %p2536_p9 = por %p2535_p5, %p2534_p13 }
 0x38b   : > { %p2530_p11 = pneg %p2529_p12 }
 0x38c   : > { %v1459_v51 = vpop.permute.xlu1 %1458 }
 0x38d   : > { %1928 = vst.msk [vmem:[%s3164_s24 + $0xd8] sm:$0xf] %vm1299_vm0, %v1459_v51  ;;  %p2537_p0 = pnand %p2536_p9, %p2530_p11 }
 0x390   : > { %v1325_v7 = vpop.permute.xlu1 %1324 }
 0x391   : > { %1894 = vst.msk [vmem:[%s3164_s24 + $0x50] sm:$0xf] %vm1299_vm0, %v1325_v7 }
 0x394   : > { %v1390_v42 = vpop.permute.xlu1 %1389 }
 0x395   : > { %1910 = vst.msk [vmem:[%s3164_s24 + $0x90] sm:$0xf] %vm1299_vm0, %v1390_v42 }
 0x398   : > { %v1455_v25 = vpop.permute.xlu1 %1454 }
 0x399   : > { %1926 = vst.msk [vmem:[%s3164_s24 + $0xd0] sm:$0xf] %vm1299_vm0, %v1455_v25  ;;  %v1139_v52 = vpop.trf.xlu0 }
 0x39c   : > { %v1331_v2 = vpop.permute.xlu1 %1330 }
 0x39d   : > { %1897 = vst.msk [vmem:[%s3164_s24 + $0x5c] sm:$0xf] %vm1299_vm0, %v1331_v2  ;;  %v1140_v56 = vpop.trf.xlu0 }
 0x39e   : > { %v2042_v17 = vpack.c.bf16 %v1140_v56, %v1139_v52 }
 0x3a0   : > { %v1327_v10 = vpop.permute.xlu1 %1326  ;;  %2043 = vst [vmem:[%s3506_s18] sm:$0xff] %v2042_v17  }
 0x3a1   : > { %1895 = vst.msk [vmem:[%s3164_s24 + $0x54] sm:$0xf] %vm1299_vm0, %v1327_v10  ;;  %v1141_v12 = vpop.trf.xlu0 }
 0x3a4   : > { %v1392_v54 = vpop.permute.xlu1 %1391 }
 0x3a5   : > { %1911 = vst.msk [vmem:[%s3164_s24 + $0x94] sm:$0xf] %vm1299_vm0, %v1392_v54  ;;  %v1142_v13 = vpop.trf.xlu0 }
 0x3a6   : > { %v2047_v22 = vpack.c.bf16 %v1142_v13, %v1141_v12 }
 0x3a8   : > { %v1337_v60 = vpop.permute.xlu1 %1336  ;;  %2086 = vst [vmem:[%s3506_s18 + $0x8] sm:$0xff] %v2047_v22  }
 0x3a9   : > { %1900 = vst.msk [vmem:[%s3164_s24 + $0x68] sm:$0xf] %vm1299_vm0, %v1337_v60  ;;  %v1143_v24 = vpop.trf.xlu0 }
 0x3ac   : > { %v1402_v62 = vpop.permute.xlu1 %1401 }
 0x3ad   : > { %1916 = vst.msk [vmem:[%s3164_s24 + $0xa8] sm:$0xf] %vm1299_vm0, %v1402_v62  ;;  %v1144_v14 = vpop.trf.xlu0 }
 0x3ae   : > { %v2052_v3 = vpack.c.bf16 %v1144_v14, %v1143_v24 }
 0x3b0   : > { %v1467_v63 = vpop.permute.xlu1 %1466  ;;  %2087 = vst [vmem:[%s3506_s18 + $0x10] sm:$0xff] %v2052_v3  }
 0x3b1   : > { %1932 = vst.msk [vmem:[%s3164_s24 + $0xe8] sm:$0xf] %vm1299_vm0, %v1467_v63  ;;  %v1145_v6 = vpop.trf.xlu0 }
 0x3b4   : > { %v1333_v0 = vpop.permute.xlu1 %1332 }
 0x3b5   : > { %1898 = vst.msk [vmem:[%s3164_s24 + $0x60] sm:$0xf] %vm1299_vm0, %v1333_v0  ;;  %v1146_v16 = vpop.trf.xlu0 }
 0x3b6   : > { %v2057_v18 = vpack.c.bf16 %v1146_v16, %v1145_v6 }
 0x3b8   : > { %v1398_v5 = vpop.permute.xlu1 %1397  ;;  %2088 = vst [vmem:[%s3506_s18 + $0x18] sm:$0xff] %v2057_v18  }
 0x3b9   : > { %1914 = vst.msk [vmem:[%s3164_s24 + $0xa0] sm:$0xf] %vm1299_vm0, %v1398_v5  ;;  %v1147_v20 = vpop.trf.xlu0 }
 0x3bc   : > { %v1463_v8 = vpop.permute.xlu1 %1462 }
 0x3bd   : > { %1930 = vst.msk [vmem:[%s3164_s24 + $0xe0] sm:$0xf] %vm1299_vm0, %v1463_v8  ;;  %v1148_v26 = vpop.trf.xlu0 }
 0x3be   : > { %v2062_v27 = vpack.c.bf16 %v1148_v26, %v1147_v20 }
 0x3c0   : > { %v1339_v19 = vpop.permute.xlu1 %1338  ;;  %2089 = vst [vmem:[%s3506_s18 + $0x20] sm:$0xff] %v2062_v27  }
 0x3c1   : > { %1901 = vst.msk [vmem:[%s3164_s24 + $0x6c] sm:$0xf] %vm1299_vm0, %v1339_v19  ;;  %v1149_v32 = vpop.trf.xlu0 }
 0x3c4   : > { %v1404_v23 = vpop.permute.xlu1 %1403 }
 0x3c5   : > { %1917 = vst.msk [vmem:[%s3164_s24 + $0xac] sm:$0xf] %vm1299_vm0, %v1404_v23  ;;  %v1150_v49 = vpop.trf.xlu0 }
 0x3c6   : > { %v2067_v15 = vpack.c.bf16 %v1150_v49, %v1149_v32 }
 0x3c8   : > { %v1335_v29 = vpop.permute.xlu1 %1334  ;;  %2090 = vst [vmem:[%s3506_s18 + $0x28] sm:$0xff] %v2067_v15  }
 0x3c9   : > { %1899 = vst.msk [vmem:[%s3164_s24 + $0x64] sm:$0xf] %vm1299_vm0, %v1335_v29  ;;  %v1151_v36 = vpop.trf.xlu0 }
 0x3cc   : > { %v1400_v34 = vpop.permute.xlu1 %1399 }
 0x3cd   : > { %1915 = vst.msk [vmem:[%s3164_s24 + $0xa4] sm:$0xf] %vm1299_vm0, %v1400_v34  ;;  %v1152_v38 = vpop.trf.xlu0 }
 0x3ce   : > { %v2072_v57 = vpack.c.bf16 %v1152_v38, %v1151_v36 }
 0x3d0   : > { %v1345_v55 = vpop.permute.xlu1 %1344  ;;  %2091 = vst [vmem:[%s3506_s18 + $0x30] sm:$0xff] %v2072_v57  }
 0x3d1   : > { %1904 = vst.msk [vmem:[%s3164_s24 + $0x78] sm:$0xf] %vm1299_vm0, %v1345_v55  ;;  %v1153_v31 = vpop.trf.xlu0 }
 0x3d4   : > { %v1410_v37 = vpop.permute.xlu1 %1409 }
 0x3d5   : > { %1920 = vst.msk [vmem:[%s3164_s24 + $0xb8] sm:$0xf] %vm1299_vm0, %v1410_v37  ;;  %v1154_v45 = vpop.trf.xlu0 }
 0x3d6   : > { %v2077_v33 = vpack.c.bf16 %v1154_v45, %v1153_v31 }
 0x3d8   : > { %v1341_v43 = vpop.permute.xlu1 %1340  ;;  %2092 = vst [vmem:[%s3506_s18 + $0x38] sm:$0xff] %v2077_v33  }
 0x3d9   : > { %1902 = vst.msk [vmem:[%s3164_s24 + $0x70] sm:$0xf] %vm1299_vm0, %v1341_v43 }
 0x3dc   : > { %v1406_v30 = vpop.permute.xlu1 %1405 }
 0x3dd   : > { %1918 = vst.msk [vmem:[%s3164_s24 + $0xb0] sm:$0xf] %vm1299_vm0, %v1406_v30 }
 0x3e0   : > { %v1471_v1 = vpop.permute.xlu1 %1470 }
 0x3e1   : > { %1934 = vst.msk [vmem:[%s3164_s24 + $0xf0] sm:$0xf] %vm1299_vm0, %v1471_v1 }
 0x3e2   : > { %2540 = shalt.err (!%p2537_p0)
}
 0x3e3   : > { %s2541_s7 = scalar_lea.hbm %s3551_s13, 1024  ;;  %s2545_s21 = scalar_lea.hbm %s3691_s15, 4096 }
 0x3e4   : > { %p2542_p2 = scmp.ne.s32.totalorder %s3551_s13, %s2541_s7  ;;  %p2546_p6 = scmp.lt.u32.totalorder %s3551_s13, %s3691_s15 }
 0x3e5   : > { %p2547_p8 = scmp.lt.u32.totalorder %s2545_s21, %s2541_s7  ;;  %p2549_p7 = scmp.lt.u32.totalorder %s2541_s7, %s3551_s13 }
 0x3e6   : > { %p2543_p10 = pnand %p2542_p2, %p2882_p4 }
 0x3e7   : > { %p2548_p3 = por %p2547_p8, %p2546_p6 }
 0x3e8   : > { %p2544_p1 = pneg %p2543_p10 }
 0x3e9   : > { %p2550_p12 = por %p2549_p7, %p2548_p3 }
 0x3eb   : > { %p2551_p11 = pnand %p2550_p12, %p2544_p1 }
 0x3ed   : > { %2554 = shalt.err (!%p2551_p11)
}
 0x3ee   : > { %s2655_s4 = smov 128   ;;  %v1347_v46 = vpop.permute.xlu1 %1346 }
 0x3ef   : > { %2160 = dma.vmem_to_hbm [thread:$0]  (%p2882_p4), %s3546_s6, 1024, %s3551_s13, %s3556_s12, %s2651_s23, %s2655_s4, %s2653_s19  }
 0x3f0   : > { %1905 = vst.msk [vmem:[%s3164_s24 + $0x7c] sm:$0xf] %vm1299_vm0, %v1347_v46 }
 0x3f2   : > { %v1412_v11 = vpop.permute.xlu1 %1411  ;;  %v1477_v4 = vpop.permute.xlu0 %1476 }
 0x3f3   : > { %1921 = vst.msk [vmem:[%s3164_s24 + $0xbc] sm:$0xf] %vm1299_vm0, %v1412_v11  ;;  %1937 = vst.msk [vmem:[%s3164_s24 + $0xfc] sm:$0xf] %vm1299_vm0, %v1477_v4 }
 0x3f6   : > { %v1343_v35 = vpop.permute.xlu1 %1342 }
 0x3f7   : > { %1903 = vst.msk [vmem:[%s3164_s24 + $0x74] sm:$0xf] %vm1299_vm0, %v1343_v35 }
 0x3fa   : > { %v1408_v40 = vpop.permute.xlu1 %1407 }
 0x3fb   : > { %1919 = vst.msk [vmem:[%s3164_s24 + $0xb4] sm:$0xf] %vm1299_vm0, %v1408_v40 }
 0x3fe   : > { %v1475_v50 = vpop.permute.xlu1 %1474 }
 0x3ff   : > { %1936 = vst.msk [vmem:[%s3164_s24 + $0xf8] sm:$0xf] %vm1299_vm0, %v1475_v50 }
 0x400   : > { %s1947_s23 = sshll.u32 %s2625_s28, 7  ;;  %s1588_s19 = sshll.u32 %s3164_s24, 4  ;;  %s1589_s19 = int_to_ptr.vmem [resolvable:$true] %s1588_s19 }
 0x401   : > { %s3692_s6 = sshll.u32 %s2621_s27, 4  ;;  %s3693_s20 = sld [smem:[#allocation30_spill]] }
 0x402   : > { %s1569_s16 = sadd.s32 %s1947_s23, %s3692_s6  ;;  %s2656_s7 = smov 1024  }
 0x403   : > { %s1948_s13 = sshll.u32 %s1569_s16, 6  ;;  %2161 = sst [smem:[#allocation16]] (%p2882_p4), %s2656_s7 }
 0x404   : > { %s2657_s11 = smov 2048   ;;  %s2658_s18 = smov 16  }
 0x405   : > { %2162 = sst [smem:[#allocation16 + $0x1]] (%p2882_p4), %s2657_s11  ;;  %s2659_s28 = smov 64  }
 0x406   : > { %2163 = sst [smem:[#allocation16 + $0x2]] (%p2882_p4), %s2658_s18  ;;  %s2660_s27 = smov 4  }
 0x407   : > { %s1571_s17 = scalar_lea.hbm %s3693_s20, %s1948_s13  ;;  %2164 = sst [smem:[#allocation16 + $0x3]] (%p2882_p4), %s2659_s28 }
 0x408   : > { %2165 = sst [smem:[#allocation16 + $0x4]] (%p2882_p4), %s2659_s28  ;;  %s2661_s24 = smov [#allocation15]  }
 0x409   : > { %2166 = sst [smem:[#allocation16 + $0x5]] (%p2882_p4), %s2660_s27  ;;  %s2662_s21 = smov 0  }
 0x40a   : > { %2167 = dma.general (%p2882_p4), %s1589_s19, 4096, %s1571_s17, %s3556_s12, %s2661_s24, [#allocation16], %s2662_s21, 0  }
 0x40b PF: > { %s3694_s10 = sld [smem:[#allocation22_spill]]  ;;  %s3695_s3 = sld [smem:[#allocation23_spill]] }
 0x40c   : > { %p2207_p13 = scmp.ge.s32.totalorder %s2637_s8, 2 }
 0x411   : > { %s1616_s4 = sand.u32 1, %s3694_s10   ;;  %p3696_p5 = scmp.ne.s32.totalorder %s3695_s3, 0 }
 0x412   : > { %s1617_s23 = scalar_lea.sflag [#allocation4], %s1616_s4 }
 0x413   : > { %p2189_p9 = pnand %p2207_p13, %p3696_p5 }
 0x415   : > { %2600 = dma.done.wait (!%p2189_p9), %s1617_s23, 1024  }
 0x416   : > { %2602 = vsyncadd (!%p2189_p9), %s1617_s23, 4294966272  ;;  %s3697_s6 = sadd.s32 4294967294, %s2637_s8  }
 0x417   : > { %s1625_s16 = sand.u32 1, %s3697_s6  }
 0x418   : > { %s1626_s13 = scalar_lea.sflag [#allocation13], %s1625_s16 }
 0x419   : > { %2604 = dma.done.wait (!%p2189_p9), %s1626_s13, 5120  }
 0x41a   : > { %2606 = vsyncadd (!%p2189_p9), %s1626_s13, 4294962176  ;;  %s29_s8 = sadd.s32 1, %s2637_s8   ;;  %s3698_s14 = sld [smem:[#allocation24_spill]] }
 0x41b   : > { %p26_p4 = scmp.ge.s32.totalorder %s29_s8, 6   ;;  %s3699_s24 = smov %s2613_s25 }
 0x41c   : > { %s3700_s25 = smov %s2617_s26  ;;  %s3701_s26 = smov %s2895_s2 }
 0x41d   : > { %s3702_s27 = smov %s2629_s29  ;;  %s3703_s28 = smov %s2633_s30 }
 0x41e   : > { %s3705_s30 = smov %s3711_s1  ;;  %28 = sbr.rel (!%p26_p4) target bundleno = 18 (0x12), region = 141 }
 0x420   : > { %s3704_s29 = smov %s3698_s14 }
 0x425   :  { %1640 = vsyncpa [#allocation3], 1 }
 0x426   :  { %1642 = vsyncpa [#allocation3 + $0x1], 1 }
 0x427   :  { %1643 = vsyncpa [#allocation6], 1 }
 0x428   :  { %1644 = vsyncpa [#allocation9], 1 }
 0x429   :  { %1645 = vsyncpa [#allocation4], 1 }
 0x42a   :  { %1647 = vsyncpa [#allocation4 + $0x1], 1 }
 0x42b   :  { %1648 = vsyncpa [#allocation13], 1 }
 0x42c   :  { %1650 = vsyncpa [#allocation13 + $0x1], 1 }

</bundles_post_ra>
